<compile_context>
chip_gen: v7x
topology: tpu7x:2x2x1
jax: 0.10.0
libtpu: 0.0.40
codegen_flags: <defaults>
</compile_context>

<pallas_src>
import functools
import math

import jax
import jax.numpy as jnp
from jax.experimental import pallas as pl
from jax.experimental.pallas import tpu as pltpu

EPS = 1e-5
LANE = 128
MXU_DTYPE = jnp.bfloat16                 # matmul operand / activation-stream dtype


def _round_up(x, m):
    return (x + m - 1) // m * m


def _vmem_capacity_bytes():
    try:
        return int(pltpu.get_tpu_info().vmem_capacity_bytes)
    except Exception:                    # conservative (v7x-sized) fallback
        return 64 * 1024 * 1024


def _conv2_geometry(H, W, imgs):
    """Padded-row geometry for the halo-free 3x3 conv (one blank row per image)."""
    P, Hp = W + 2, H + 1                 # physical row stride / rows per image
    L = _round_up(imgs * Hp * P, 8)      # matmul M (padded layout, incl. dead rows)
    hpad_rows = _round_up(L + 2 * P + 2, 8)
    return P, Hp, L, hpad_rows


def _tile_bytes(imgs, H, W, cin_p, cm_p):
    """Per-tile VMEM footprint of the widest stage, INCLUDING the x2 pipeline
    double-buffering of every streamed (rows, C) block."""
    tr = imgs * H * W
    _, _, L, hpad_rows = _conv2_geometry(H, W, imgs)
    hpad = hpad_rows * cm_p * 4                         # f32 padded scratch
    acc = 2 * L * cm_p * 4                              # f32 accumulator + live temp
    s1 = 2 * tr * (2 * cin_p + 2 * cm_p) + tr * 4 * cm_p + 2 * 2 * cin_p * cm_p
    s2 = (2 * tr * (2 * cm_p + 2 * cm_p) + tr * 4 * cm_p + hpad + acc
          + 2 * 2 * 9 * cm_p * cm_p)
    s3 = 2 * tr * (2 * cm_p + 2 * cin_p) + tr * 4 * cin_p + 2 * 2 * cm_p * cin_p
    s4 = 2 * tr * (2 * cin_p + 2 * cin_p + 4 * cin_p)
    return max(s1, s2, s3, s4)


def _pick_imgs_per_tile(N, H, W, cin_p, cm_p, vmem_budget, rows_target):
    """Row tiles are whole images (halo-free 3x3 conv).  Pick a divisor of N such
    that (a) the block row count is 8-aligned, (b) the per-tile working set (with
    double-buffering) fits the generation-aware VMEM budget, and (c) the tile count
    is even (>=2) whenever possible so both v7x TensorCores get work."""
    rows_img = H * W
    m_align = 8 // math.gcd(rows_img, 8)      # imgs multiple giving 8-aligned rows
    cands = [d for d in range(1, N + 1)
             if N % d == 0 and (d * rows_img) % 8 == 0 and d * H <= 128]
    if not cands:
        # TODO(synk): shapes where no divisor of N gives an 8-aligned row count fall
        # back to a single full-array tile (block_shape == array shape).
        return N
    cap = max(m_align * rows_img, rows_target)
    feas = [d for d in cands
            if d * rows_img <= cap and _tile_bytes(d, H, W, cin_p, cm_p) <= vmem_budget]
    if not feas:
        feas = [min(cands)]
    even = [d for d in feas if (N // d) % 2 == 0]
    return max(even) if even else max(feas)


# --------------------------------------------------------------------------- #
# Kernels                                                                      #
# --------------------------------------------------------------------------- #
def _stats(y):
    """Per-tile single-pass BN statistics: (1, 2, C) = [sum, sum of squares], f32."""
    s1 = jnp.sum(y, axis=0, keepdims=True)
    s2 = jnp.sum(y * y, axis=0, keepdims=True)
    return jnp.concatenate([s1, s2], axis=0)[None]


def _conv1_kernel(x_ref, w_ref, y_ref, st_ref):
    # 1x1 conv (Cin -> Cm): bf16 operands, f32 accumulate.  bf16 stream out.
    y = jnp.dot(x_ref[...], w_ref[...], preferred_element_type=jnp.float32)
    y_ref[...] = y.astype(y_ref.dtype)
    st_ref[...] = _stats(y)


def _make_conv2_kernel(H, W, cm_p, imgs):
    P, Hp, L, hpad_rows = _conv2_geometry(H, W, imgs)
    base = P + 1                         # hpad row of pixel (image 0, row 0, col 0)

    def conv2_kernel(y1_ref, sc_ref, sh_ref, w2_ref, y2_ref, st_ref, hpad_ref):
        # Zero the padded scratch every step (halo rows/cols + inter-image blanks).
        # Must run every iteration: with a "parallel" grid each TensorCore owns a
        # private scratch and an arbitrary subset of iterations.
        hpad_ref[...] = jnp.zeros((hpad_rows, cm_p), jnp.float32)

        # BN1 apply (precomputed global scale/shift) + ReLU, in f32.
        h = jnp.maximum(
            y1_ref[...].astype(jnp.float32) * sc_ref[...] + sh_ref[...], 0.0)

        # Scatter h into the physically padded layout: image row (n, i) occupies
        # hpad rows [(n*Hp + i + 1)*P + 1, +W).  All slices are static.
        for n in range(imgs):
            for i in range(H):
                src = (n * H + i) * W
                dst = (n * Hp + i + 1) * P + 1
                hpad_ref[dst:dst + W, :] = h[src:src + W, :]

        # 3x3 conv = nine accumulated K=Cm MXU matmuls over UNMASKED static
        # row-slices of the padded scratch (no im2col slab, no border selects).
        acc = None
        for di in (-1, 0, 1):
            for dj in (-1, 0, 1):
                k = (di + 1) * 3 + (dj + 1)
                start = base + di * P + dj
                tap = hpad_ref[start:start + L, :].astype(MXU_DTYPE)
                part = jnp.dot(tap, w2_ref[k * cm_p:(k + 1) * cm_p, :],
                               preferred_element_type=jnp.float32)
                acc = part if acc is None else acc + part

        # Gather valid rows back to row-major pixel order; single lane-dense store.
        pieces = []
        for n in range(imgs):
            for i in range(H):
                r0 = (n * Hp + i) * P
                pieces.append(acc[r0:r0 + W, :])
        y2 = jnp.concatenate(pieces, axis=0) if len(pieces) > 1 else pieces[0]
        y2_ref[...] = y2.astype(y2_ref.dtype)
        st_ref[...] = _stats(y2)

    return conv2_kernel, hpad_rows


def _conv3_kernel(y2_ref, sc_ref, sh_ref, w_ref, y_ref, st_ref):
    # BN2 apply + ReLU + 1x1 conv (Cm -> 4*Cm) + BN3 partial stats.
    h = jnp.maximum(y2_ref[...].astype(jnp.float32) * sc_ref[...] + sh_ref[...], 0.0)
    y = jnp.dot(h.astype(MXU_DTYPE), w_ref[...], preferred_element_type=jnp.float32)
    y_ref[...] = y.astype(y_ref.dtype)
    st_ref[...] = _stats(y)


def _finalize_kernel(y3_ref, x_ref, sc_ref, sh_ref, o_ref):
    # BN3 apply + identity residual (bf16 slab, re-read only here) + final ReLU.
    o_ref[...] = jnp.maximum(
        y3_ref[...].astype(jnp.float32) * sc_ref[...] + sh_ref[...]
        + x_ref[...].astype(jnp.float32), 0.0)


# --------------------------------------------------------------------------- #
# Wrapper                                                                      #
# --------------------------------------------------------------------------- #
def _bn_scale_shift(stats, gamma, beta, count, c_real, c_pad):
    """Fold global training-mode BN (single-pass sums) into per-channel scale/shift."""
    s = jnp.sum(stats, axis=0)                       # (2, c_pad): [sum, sumsq]
    mean = s[0, :c_real] / count
    var = s[1, :c_real] / count - mean * mean        # biased variance, like PyTorch
    scale = gamma.reshape(-1) * jax.lax.rsqrt(var + EPS)
    shift = beta.reshape(-1) - mean * scale
    pad = c_pad - c_real                             # padded channels stay exactly 0
    return (jnp.pad(scale, (0, pad)).reshape(1, c_pad),
            jnp.pad(shift, (0, pad)).reshape(1, c_pad))


@functools.partial(jax.jit, static_argnames=("rows_per_tile_target",))
def block_forward(x_nchw, params, *, rows_per_tile_target=4096):
    """Pallas forward of Block (downsample=None).  x_nchw: (N, Cin, H, W) f32."""
    N, Cin, H, W = x_nchw.shape
    Cm = params["w1"].shape[1]
    assert Cin == 4 * Cm, "identity residual requires in_channels == 4*out_channels"
    cin_p = _round_up(Cin, LANE)
    cm_p = _round_up(Cm, LANE)
    R = N * H * W

    vmem_cap = _vmem_capacity_bytes()                    # generation-aware budget
    vmem_limit = min(int(vmem_cap * 0.875), vmem_cap - 6 * 1024 * 1024)
    imgs = _pick_imgs_per_tile(N, H, W, cin_p, cm_p,
                               vmem_budget=int(vmem_limit * 0.7),
                               rows_target=rows_per_tile_target)
    tr = imgs * H * W
    n_tiles = N // imgs

    # Single channels-last bf16 slab (lane-padded): feeds conv1 AND the residual.
    x_bf = jnp.pad(jnp.transpose(x_nchw, (0, 2, 3, 1)).reshape(R, Cin),
                   ((0, 0), (0, cin_p - Cin))).astype(MXU_DTYPE)

    # Zero-padded bf16 weights (padded channels stay exactly zero end-to-end).
    w1 = jnp.pad(params["w1"], ((0, cin_p - Cin), (0, cm_p - Cm))).astype(MXU_DTYPE)
    w2 = jnp.pad(params["w2"], ((0, 0), (0, cm_p - Cm), (0, cm_p - Cm)))
    w2 = w2.reshape(9 * cm_p, cm_p).astype(MXU_DTYPE)
    w3 = jnp.pad(params["w3"], ((0, cm_p - Cm), (0, cin_p - Cin))).astype(MXU_DTYPE)

    cparams = pltpu.CompilerParams(dimension_semantics=("parallel",),
                                   vmem_limit_bytes=vmem_limit)

    def row_spec(c):
        return pl.BlockSpec((tr, c), lambda i: (i, 0))

    def full_spec(shape):
        return pl.BlockSpec(shape, lambda i: (0,) * len(shape))

    def st_spec(c):
        return pl.BlockSpec((1, 2, c), lambda i: (i, 0, 0))

    def st_shape(c):
        return jax.ShapeDtypeStruct((n_tiles, 2, c), jnp.float32)

    # -- stage 1: 1x1 conv (Cin -> Cm) + BN1 stats ------------------------------------
    y1, st1 = pl.pallas_call(
        _conv1_kernel,
        grid=(n_tiles,),
        in_specs=[row_spec(cin_p), full_spec((cin_p, cm_p))],
        out_specs=(row_spec(cm_p), st_spec(cm_p)),
        out_shape=(jax.ShapeDtypeStruct((R, cm_p), MXU_DTYPE), st_shape(cm_p)),
        compiler_params=cparams,
        cost_estimate=pl.CostEstimate(flops=2 * R * cin_p * cm_p, transcendentals=0,
                                      bytes_accessed=R * (2 * cin_p + 2 * cm_p)),
    )(x_bf, w1)
    sc1, sh1 = _bn_scale_shift(st1, params["g1"], params["b1"], R, Cm, cm_p)

    # -- stage 2: BN1+ReLU, halo-free padded-layout 3x3 conv, + BN2 stats --------------
    conv2_kernel, hpad_rows = _make_conv2_kernel(H, W, cm_p, imgs)
    y2, st2 = pl.pallas_call(
        conv2_kernel,
        grid=(n_tiles,),
        in_specs=[row_spec(cm_p), full_spec((1, cm_p)), full_spec((1, cm_p)),
                  full_spec((9 * cm_p, cm_p))],
        out_specs=(row_spec(cm_p), st_spec(cm_p)),
        out_shape=(jax.ShapeDtypeStruct((R, cm_p), MXU_DTYPE), st_shape(cm_p)),
        scratch_shapes=[pltpu.VMEM((hpad_rows, cm_p), jnp.float32)],
        compiler_params=cparams,
        cost_estimate=pl.CostEstimate(flops=2 * R * 9 * cm_p * cm_p, transcendentals=0,
                                      bytes_accessed=R * (2 * cm_p + 2 * cm_p)),
    )(y1, sc1, sh1, w2)
    sc2, sh2 = _bn_scale_shift(st2, params["g2"], params["b2"], R, Cm, cm_p)

    # -- stage 3: BN2+ReLU, 1x1 conv (Cm -> 4*Cm), + BN3 stats -------------------------
    y3, st3 = pl.pallas_call(
        _conv3_kernel,
        grid=(n_tiles,),
        in_specs=[row_spec(cm_p), full_spec((1, cm_p)), full_spec((1, cm_p)),
                  full_spec((cm_p, cin_p))],
        out_specs=(row_spec(cin_p), st_spec(cin_p)),
        out_shape=(jax.ShapeDtypeStruct((R, cin_p), MXU_DTYPE), st_shape(cin_p)),
        compiler_params=cparams,
        cost_estimate=pl.CostEstimate(flops=2 * R * cm_p * cin_p, transcendentals=0,
                                      bytes_accessed=R * (2 * cm_p + 2 * cin_p)),
    )(y2, sc2, sh2, w3)
    sc3, sh3 = _bn_scale_shift(st3, params["g3"], params["b3"], R, Cin, cin_p)

    # -- stage 4: BN3 apply + residual + final ReLU ------------------------------------
    out_flat = pl.pallas_call(
        _finalize_kernel,
        grid=(n_tiles,),
        in_specs=[row_spec(cin_p), row_spec(cin_p),
                  full_spec((1, cin_p)), full_spec((1, cin_p))],
        out_specs=row_spec(cin_p),
        out_shape=jax.ShapeDtypeStruct((R, cin_p), jnp.float32),
        compiler_params=cparams,
        cost_estimate=pl.CostEstimate(flops=4 * R * cin_p, transcendentals=0,
                                      bytes_accessed=R * 8 * cin_p),
    )(y3, x_bf, sc3, sh3)

    out = out_flat[:, :Cin].reshape(N, H, W, Cin)
    return jnp.transpose(out, (0, 3, 1, 2))


# ------------------------------- plain-JAX reference ------------------------------- #
def block_reference(x_nchw, params):
    """Reference with the same bf16-operand / f32-accumulate matmul precision."""
    x = jnp.transpose(x_nchw, (0, 2, 3, 1))                 # NHWC
    dn = ("NHWC", "HWIO", "NHWC")
    c_mid = params["w1"].shape[1]

    def conv(y, w, padding):
        return jax.lax.conv_general_dilated(
            y.astype(MXU_DTYPE), w.astype(MXU_DTYPE), (1, 1), padding,
            dimension_numbers=dn, preferred_element_type=jnp.float32)

    def bn(y, g, b):
        m = jnp.mean(y, axis=(0, 1, 2), keepdims=True)
        v = jnp.mean((y - m) ** 2, axis=(0, 1, 2), keepdims=True)
        return (y - m) * jax.lax.rsqrt(v + EPS) * g.reshape(1, 1, 1, -1) \
            + b.reshape(1, 1, 1, -1)

    y = conv(x, params["w1"][None, None], "VALID")
    y = jax.nn.relu(bn(y, params["g1"], params["b1"]))
    y = conv(y, params["w2"].reshape(3, 3, c_mid, c_mid), ((1, 1), (1, 1)))
    y = jax.nn.relu(bn(y, params["g2"], params["b2"]))
    y = conv(y, params["w3"][None, None], "VALID")
    y = bn(y, params["g3"], params["b3"])
    out = jax.nn.relu(y + x)
    return jnp.transpose(out, (0, 3, 1, 2))


def init_params(key, in_channels, out_channels):
    cm, c4 = out_channels, out_channels * 4
    assert c4 == in_channels
    ks = jax.random.split(key, 9)
    return {
        "w1": 0.1 * jax.random.normal(ks[0], (in_channels, cm), jnp.float32),
        "g1": 1.0 + 0.1 * jax.random.normal(ks[1], (1, cm), jnp.float32),
        "b1": 0.1 * jax.random.normal(ks[2], (1, cm), jnp.float32),
        "w2": 0.1 * jax.random.normal(ks[3], (9, cm, cm), jnp.float32),
        "g2": 1.0 + 0.1 * jax.random.normal(ks[4], (1, cm), jnp.float32),
        "b2": 0.1 * jax.random.normal(ks[5], (1, cm), jnp.float32),
        "w3": 0.1 * jax.random.normal(ks[6], (cm, c4), jnp.float32),
        "g3": 1.0 + 0.1 * jax.random.normal(ks[7], (1, c4), jnp.float32),
        "b3": 0.1 * jax.random.normal(ks[8], (1, c4), jnp.float32),
    }


if __name__ == "__main__":
    N, H, W = 2, 8, 8
    out_channels = 8
    in_channels = out_channels * 4          # identity residual (downsample=None)

    key = jax.random.PRNGKey(0)
    kx, kp = jax.random.split(key)
    x = jax.random.normal(kx, (N, in_channels, H, W), jnp.float32)
    params = init_params(kp, in_channels, out_channels)

    # Small rows_per_tile_target so the toy shape still exercises the multi-tile grid
    # and the cross-tile BN-stats reduction (grid = (2,), one image per tile).
    out = jax.block_until_ready(block_forward(x, params, rows_per_tile_target=H * W))
    ref = jax.block_until_ready(block_reference(x, params))

    assert out.shape == (N, in_channels, H, W)
    max_err = float(jnp.max(jnp.abs(out - ref)))
    # bf16 MXU operands everywhere + bf16 inter-stage activation streams.
    assert jnp.allclose(out, ref, atol=3e-2, rtol=3e-2), max_err
    print("KERNEL_OK")
</pallas_src>

<mosaic_0001>
module attributes {stable_mosaic.version = 11 : i64} {
  func.func @_conv1_kernel(%arg0: i32, %arg1: memref<64x128xbf16, #tpu.memory_space<vmem>>, %arg2: memref<128x128xbf16, #tpu.memory_space<vmem>>, %arg3: memref<64x128xbf16, #tpu.memory_space<vmem>>, %arg4: memref<1x2x128xf32, #tpu.memory_space<vmem>>) attributes {dimension_semantics = [#tpu.dimension_semantics<parallel>], iteration_bounds = array<i64: 2>, scalar_prefetch = 0 : i64, scratch_operands = 0 : i64, tpu.core_type = #tpu.core_type<tc>, window_params = [{transform_indices = @transform_0, window_bounds = array<i64: 64, 128>}, {pipeline_mode = #tpu.pipeline_mode<synchronous>, transform_indices = @transform_1, window_bounds = array<i64: 128, 128>}, {transform_indices = @transform_2, window_bounds = array<i64: 64, 128>}, {transform_indices = @transform_3, window_bounds = array<i64: 1, 2, 128>}]} {
    %c0 = arith.constant 0 : index
    %c0_0 = arith.constant 0 : index
    %0 = vector.load %arg1[%c0, %c0_0] : memref<64x128xbf16, #tpu.memory_space<vmem>>, vector<64x128xbf16>
    %c0_1 = arith.constant 0 : index
    %c0_2 = arith.constant 0 : index
    %1 = vector.load %arg2[%c0_1, %c0_2] : memref<128x128xbf16, #tpu.memory_space<vmem>>, vector<128x128xbf16>
    %cst = arith.constant dense<0.000000e+00> : vector<64x128xf32>
    %2 = tpu.matmul %0, %1, %cst {dimension_numbers = #tpu.dot_dimension_numbers<[1], [0], [0], [1], [0, 0, 1, 1], [], []>} : vector<64x128xbf16>, vector<128x128xbf16>, vector<64x128xf32> -> vector<64x128xf32>
    %3 = arith.truncf %2 : vector<64x128xf32> to vector<64x128xbf16>
    %c0_3 = arith.constant 0 : index
    %c0_4 = arith.constant 0 : index
    %4 = vector.load %arg3[%c0_3, %c0_4] : memref<64x128xbf16, #tpu.memory_space<vmem>>, vector<64x128xbf16>
    tpu.vector_store %arg3[%c0_3, %c0_4], %3 {strides = array<i32>} : memref<64x128xbf16, #tpu.memory_space<vmem>>, vector<64x128xbf16>,
    %cst_5 = arith.constant dense<0.000000e+00> : vector<128xf32>
    %5 = vector.multi_reduction <add>, %2, %cst_5 [0] : vector<64x128xf32> to vector<128xf32>
    %6 = vector.shape_cast %5 : vector<128xf32> to vector<1x128xf32>
    %7 = arith.mulf %2, %2 : vector<64x128xf32>
    %cst_6 = arith.constant dense<0.000000e+00> : vector<128xf32>
    %8 = vector.multi_reduction <add>, %7, %cst_6 [0] : vector<64x128xf32> to vector<128xf32>
    %9 = vector.shape_cast %8 : vector<128xf32> to vector<1x128xf32>
    %10 = tpu.concatenate %6, %9 in 0 : vector<1x128xf32>, vector<1x128xf32> -> vector<2x128xf32>
    %11 = vector.shape_cast %10 : vector<2x128xf32> to vector<1x2x128xf32>
    %c0_7 = arith.constant 0 : index
    %c0_8 = arith.constant 0 : index
    %c0_9 = arith.constant 0 : index
    %12 = vector.load %arg4[%c0_7, %c0_8, %c0_9] : memref<1x2x128xf32, #tpu.memory_space<vmem>>, vector<1x2x128xf32>
    tpu.vector_store %arg4[%c0_7, %c0_8, %c0_9], %11 {strides = array<i32>} : memref<1x2x128xf32, #tpu.memory_space<vmem>>, vector<1x2x128xf32>,
    return
  }
  func.func @transform_0(%arg0: i32) -> (i32, i32) {
    %c0_i32 = arith.constant 0 : i32
    %c0_i32_0 = arith.constant 0 : i32
    return %arg0, %c0_i32 : i32, i32
  }
  func.func @transform_1(%arg0: i32) -> (i32, i32) {
    %c0_i32 = arith.constant 0 : i32
    %c0_i32_0 = arith.constant 0 : i32
    %c0_i32_1 = arith.constant 0 : i32
    return %c0_i32, %c0_i32_0 : i32, i32
  }
  func.func @transform_2(%arg0: i32) -> (i32, i32) {
    %c0_i32 = arith.constant 0 : i32
    %c0_i32_0 = arith.constant 0 : i32
    return %arg0, %c0_i32 : i32, i32
  }
  func.func @transform_3(%arg0: i32) -> (i32, i32, i32) {
    %c0_i32 = arith.constant 0 : i32
    %c0_i32_0 = arith.constant 0 : i32
    %c0_i32_1 = arith.constant 0 : i32
    return %arg0, %c0_i32, %c0_i32_0 : i32, i32, i32
  }
}

module attributes {stable_mosaic.version = 11 : i64} {
  func.func @conv2_kernel(%arg0: i32, %arg1: memref<64x128xbf16, #tpu.memory_space<vmem>>, %arg2: memref<1x128xf32, #tpu.memory_space<vmem>>, %arg3: memref<1x128xf32, #tpu.memory_space<vmem>>, %arg4: memref<1152x128xbf16, #tpu.memory_space<vmem>>, %arg5: memref<64x128xbf16, #tpu.memory_space<vmem>>, %arg6: memref<1x2x128xf32, #tpu.memory_space<vmem>>, %arg7: memref<120x128xf32, #tpu.memory_space<vmem>>) attributes {dimension_semantics = [#tpu.dimension_semantics<parallel>], iteration_bounds = array<i64: 2>, scalar_prefetch = 0 : i64, scratch_operands = 1 : i64, tpu.core_type = #tpu.core_type<tc>, window_params = [{transform_indices = @transform_0, window_bounds = array<i64: 64, 128>}, {pipeline_mode = #tpu.pipeline_mode<synchronous>, transform_indices = @transform_1, window_bounds = array<i64: 1, 128>}, {pipeline_mode = #tpu.pipeline_mode<synchronous>, transform_indices = @transform_2, window_bounds = array<i64: 1, 128>}, {pipeline_mode = #tpu.pipeline_mode<synchronous>, transform_indices = @transform_3, window_bounds = array<i64: 1152, 128>}, {transform_indices = @transform_4, window_bounds = array<i64: 64, 128>}, {transform_indices = @transform_5, window_bounds = array<i64: 1, 2, 128>}]} {
    %cst = arith.constant 0.000000e+00 : f32
    %0 = vector.broadcast %cst : f32 to vector<120x128xf32>
    %c0 = arith.constant 0 : index
    %c0_0 = arith.constant 0 : index
    %1 = vector.load %arg7[%c0, %c0_0] : memref<120x128xf32, #tpu.memory_space<vmem>>, vector<120x128xf32>
    tpu.vector_store %arg7[%c0, %c0_0], %0 {strides = array<i32>} : memref<120x128xf32, #tpu.memory_space<vmem>>, vector<120x128xf32>,
    %c0_1 = arith.constant 0 : index
    %c0_2 = arith.constant 0 : index
    %2 = vector.load %arg1[%c0_1, %c0_2] : memref<64x128xbf16, #tpu.memory_space<vmem>>, vector<64x128xbf16>
    %3 = arith.extf %2 : vector<64x128xbf16> to vector<64x128xf32>
    %c0_3 = arith.constant 0 : index
    %c0_4 = arith.constant 0 : index
    %4 = vector.load %arg2[%c0_3, %c0_4] : memref<1x128xf32, #tpu.memory_space<vmem>>, vector<1x128xf32>
    %5 = vector.broadcast %4 : vector<1x128xf32> to vector<64x128xf32>
    %6 = arith.mulf %3, %5 : vector<64x128xf32>
    %c0_5 = arith.constant 0 : index
    %c0_6 = arith.constant 0 : index
    %7 = vector.load %arg3[%c0_5, %c0_6] : memref<1x128xf32, #tpu.memory_space<vmem>>, vector<1x128xf32>
    %8 = vector.broadcast %7 : vector<1x128xf32> to vector<64x128xf32>
    %9 = arith.addf %6, %8 : vector<64x128xf32>
    %cst_7 = arith.constant 0.000000e+00 : f32
    %10 = vector.broadcast %cst_7 : f32 to vector<64x128xf32>
    %11 = arith.maximumf %9, %10 : vector<64x128xf32>
    %12 = vector.extract_strided_slice %11 {offsets = [0, 0], sizes = [8, 128], strides = [1, 1]} : vector<64x128xf32> to vector<8x128xf32>
    %c11 = arith.constant 11 : index
    %c0_8 = arith.constant 0 : index
    %13 = vector.load %arg7[%c11, %c0_8] : memref<120x128xf32, #tpu.memory_space<vmem>>, vector<8x128xf32>
    tpu.vector_store %arg7[%c11, %c0_8], %12 {strides = array<i32>} : memref<120x128xf32, #tpu.memory_space<vmem>>, vector<8x128xf32>,
    %14 = vector.extract_strided_slice %11 {offsets = [8, 0], sizes = [8, 128], strides = [1, 1]} : vector<64x128xf32> to vector<8x128xf32>
    %c21 = arith.constant 21 : index
    %c0_9 = arith.constant 0 : index
    %15 = vector.load %arg7[%c21, %c0_9] : memref<120x128xf32, #tpu.memory_space<vmem>>, vector<8x128xf32>
    tpu.vector_store %arg7[%c21, %c0_9], %14 {strides = array<i32>} : memref<120x128xf32, #tpu.memory_space<vmem>>, vector<8x128xf32>,
    %16 = vector.extract_strided_slice %11 {offsets = [16, 0], sizes = [8, 128], strides = [1, 1]} : vector<64x128xf32> to vector<8x128xf32>
    %c31 = arith.constant 31 : index
    %c0_10 = arith.constant 0 : index
    %17 = vector.load %arg7[%c31, %c0_10] : memref<120x128xf32, #tpu.memory_space<vmem>>, vector<8x128xf32>
    tpu.vector_store %arg7[%c31, %c0_10], %16 {strides = array<i32>} : memref<120x128xf32, #tpu.memory_space<vmem>>, vector<8x128xf32>,
    %18 = vector.extract_strided_slice %11 {offsets = [24, 0], sizes = [8, 128], strides = [1, 1]} : vector<64x128xf32> to vector<8x128xf32>
    %c41 = arith.constant 41 : index
    %c0_11 = arith.constant 0 : index
    %19 = vector.load %arg7[%c41, %c0_11] : memref<120x128xf32, #tpu.memory_space<vmem>>, vector<8x128xf32>
    tpu.vector_store %arg7[%c41, %c0_11], %18 {strides = array<i32>} : memref<120x128xf32, #tpu.memory_space<vmem>>, vector<8x128xf32>,
    %20 = vector.extract_strided_slice %11 {offsets = [32, 0], sizes = [8, 128], strides = [1, 1]} : vector<64x128xf32> to vector<8x128xf32>
    %c51 = arith.constant 51 : index
    %c0_12 = arith.constant 0 : index
    %21 = vector.load %arg7[%c51, %c0_12] : memref<120x128xf32, #tpu.memory_space<vmem>>, vector<8x128xf32>
    tpu.vector_store %arg7[%c51, %c0_12], %20 {strides = array<i32>} : memref<120x128xf32, #tpu.memory_space<vmem>>, vector<8x128xf32>,
    %22 = vector.extract_strided_slice %11 {offsets = [40, 0], sizes = [8, 128], strides = [1, 1]} : vector<64x128xf32> to vector<8x128xf32>
    %c61 = arith.constant 61 : index
    %c0_13 = arith.constant 0 : index
    %23 = vector.load %arg7[%c61, %c0_13] : memref<120x128xf32, #tpu.memory_space<vmem>>, vector<8x128xf32>
    tpu.vector_store %arg7[%c61, %c0_13], %22 {strides = array<i32>} : memref<120x128xf32, #tpu.memory_space<vmem>>, vector<8x128xf32>,
    %24 = vector.extract_strided_slice %11 {offsets = [48, 0], sizes = [8, 128], strides = [1, 1]} : vector<64x128xf32> to vector<8x128xf32>
    %c71 = arith.constant 71 : index
    %c0_14 = arith.constant 0 : index
    %25 = vector.load %arg7[%c71, %c0_14] : memref<120x128xf32, #tpu.memory_space<vmem>>, vector<8x128xf32>
    tpu.vector_store %arg7[%c71, %c0_14], %24 {strides = array<i32>} : memref<120x128xf32, #tpu.memory_space<vmem>>, vector<8x128xf32>,
    %26 = vector.extract_strided_slice %11 {offsets = [56, 0], sizes = [8, 128], strides = [1, 1]} : vector<64x128xf32> to vector<8x128xf32>
    %c81 = arith.constant 81 : index
    %c0_15 = arith.constant 0 : index
    %27 = vector.load %arg7[%c81, %c0_15] : memref<120x128xf32, #tpu.memory_space<vmem>>, vector<8x128xf32>
    tpu.vector_store %arg7[%c81, %c0_15], %26 {strides = array<i32>} : memref<120x128xf32, #tpu.memory_space<vmem>>, vector<8x128xf32>,
    %c0_16 = arith.constant 0 : index
    %c0_17 = arith.constant 0 : index
    %28 = vector.load %arg7[%c0_16, %c0_17] : memref<120x128xf32, #tpu.memory_space<vmem>>, vector<96x128xf32>
    %29 = arith.truncf %28 : vector<96x128xf32> to vector<96x128xbf16>
    %c0_18 = arith.constant 0 : index
    %c0_19 = arith.constant 0 : index
    %30 = vector.load %arg4[%c0_18, %c0_19] : memref<1152x128xbf16, #tpu.memory_space<vmem>>, vector<128x128xbf16>
    %cst_20 = arith.constant dense<0.000000e+00> : vector<96x128xf32>
    %31 = tpu.matmul %29, %30, %cst_20 {dimension_numbers = #tpu.dot_dimension_numbers<[1], [0], [0], [1], [0, 0, 1, 1], [], []>} : vector<96x128xbf16>, vector<128x128xbf16>, vector<96x128xf32> -> vector<96x128xf32>
    %c1 = arith.constant 1 : index
    %c0_21 = arith.constant 0 : index
    %32 = vector.load %arg7[%c1, %c0_21] : memref<120x128xf32, #tpu.memory_space<vmem>>, vector<96x128xf32>
    %33 = arith.truncf %32 : vector<96x128xf32> to vector<96x128xbf16>
    %c128 = arith.constant 128 : index
    %c0_22 = arith.constant 0 : index
    %34 = vector.load %arg4[%c128, %c0_22] : memref<1152x128xbf16, #tpu.memory_space<vmem>>, vector<128x128xbf16>
    %cst_23 = arith.constant dense<0.000000e+00> : vector<96x128xf32>
    %35 = tpu.matmul %33, %34, %cst_23 {dimension_numbers = #tpu.dot_dimension_numbers<[1], [0], [0], [1], [0, 0, 1, 1], [], []>} : vector<96x128xbf16>, vector<128x128xbf16>, vector<96x128xf32> -> vector<96x128xf32>
    %36 = arith.addf %31, %35 : vector<96x128xf32>
    %c2 = arith.constant 2 : index
    %c0_24 = arith.constant 0 : index
    %37 = vector.load %arg7[%c2, %c0_24] : memref<120x128xf32, #tpu.memory_space<vmem>>, vector<96x128xf32>
    %38 = arith.truncf %37 : vector<96x128xf32> to vector<96x128xbf16>
    %c256 = arith.constant 256 : index
    %c0_25 = arith.constant 0 : index
    %39 = vector.load %arg4[%c256, %c0_25] : memref<1152x128xbf16, #tpu.memory_space<vmem>>, vector<128x128xbf16>
    %cst_26 = arith.constant dense<0.000000e+00> : vector<96x128xf32>
    %40 = tpu.matmul %38, %39, %cst_26 {dimension_numbers = #tpu.dot_dimension_numbers<[1], [0], [0], [1], [0, 0, 1, 1], [], []>} : vector<96x128xbf16>, vector<128x128xbf16>, vector<96x128xf32> -> vector<96x128xf32>
    %41 = arith.addf %36, %40 : vector<96x128xf32>
    %c10 = arith.constant 10 : index
    %c0_27 = arith.constant 0 : index
    %42 = vector.load %arg7[%c10, %c0_27] : memref<120x128xf32, #tpu.memory_space<vmem>>, vector<96x128xf32>
    %43 = arith.truncf %42 : vector<96x128xf32> to vector<96x128xbf16>
    %c384 = arith.constant 384 : index
    %c0_28 = arith.constant 0 : index
    %44 = vector.load %arg4[%c384, %c0_28] : memref<1152x128xbf16, #tpu.memory_space<vmem>>, vector<128x128xbf16>
    %cst_29 = arith.constant dense<0.000000e+00> : vector<96x128xf32>
    %45 = tpu.matmul %43, %44, %cst_29 {dimension_numbers = #tpu.dot_dimension_numbers<[1], [0], [0], [1], [0, 0, 1, 1], [], []>} : vector<96x128xbf16>, vector<128x128xbf16>, vector<96x128xf32> -> vector<96x128xf32>
    %46 = arith.addf %41, %45 : vector<96x128xf32>
    %c11_30 = arith.constant 11 : index
    %c0_31 = arith.constant 0 : index
    %47 = vector.load %arg7[%c11_30, %c0_31] : memref<120x128xf32, #tpu.memory_space<vmem>>, vector<96x128xf32>
    %48 = arith.truncf %47 : vector<96x128xf32> to vector<96x128xbf16>
    %c512 = arith.constant 512 : index
    %c0_32 = arith.constant 0 : index
    %49 = vector.load %arg4[%c512, %c0_32] : memref<1152x128xbf16, #tpu.memory_space<vmem>>, vector<128x128xbf16>
    %cst_33 = arith.constant dense<0.000000e+00> : vector<96x128xf32>
    %50 = tpu.matmul %48, %49, %cst_33 {dimension_numbers = #tpu.dot_dimension_numbers<[1], [0], [0], [1], [0, 0, 1, 1], [], []>} : vector<96x128xbf16>, vector<128x128xbf16>, vector<96x128xf32> -> vector<96x128xf32>
    %51 = arith.addf %46, %50 : vector<96x128xf32>
    %c12 = arith.constant 12 : index
    %c0_34 = arith.constant 0 : index
    %52 = vector.load %arg7[%c12, %c0_34] : memref<120x128xf32, #tpu.memory_space<vmem>>, vector<96x128xf32>
    %53 = arith.truncf %52 : vector<96x128xf32> to vector<96x128xbf16>
    %c640 = arith.constant 640 : index
    %c0_35 = arith.constant 0 : index
    %54 = vector.load %arg4[%c640, %c0_35] : memref<1152x128xbf16, #tpu.memory_space<vmem>>, vector<128x128xbf16>
    %cst_36 = arith.constant dense<0.000000e+00> : vector<96x128xf32>
    %55 = tpu.matmul %53, %54, %cst_36 {dimension_numbers = #tpu.dot_dimension_numbers<[1], [0], [0], [1], [0, 0, 1, 1], [], []>} : vector<96x128xbf16>, vector<128x128xbf16>, vector<96x128xf32> -> vector<96x128xf32>
    %56 = arith.addf %51, %55 : vector<96x128xf32>
    %c20 = arith.constant 20 : index
    %c0_37 = arith.constant 0 : index
    %57 = vector.load %arg7[%c20, %c0_37] : memref<120x128xf32, #tpu.memory_space<vmem>>, vector<96x128xf32>
    %58 = arith.truncf %57 : vector<96x128xf32> to vector<96x128xbf16>
    %c768 = arith.constant 768 : index
    %c0_38 = arith.constant 0 : index
    %59 = vector.load %arg4[%c768, %c0_38] : memref<1152x128xbf16, #tpu.memory_space<vmem>>, vector<128x128xbf16>
    %cst_39 = arith.constant dense<0.000000e+00> : vector<96x128xf32>
    %60 = tpu.matmul %58, %59, %cst_39 {dimension_numbers = #tpu.dot_dimension_numbers<[1], [0], [0], [1], [0, 0, 1, 1], [], []>} : vector<96x128xbf16>, vector<128x128xbf16>, vector<96x128xf32> -> vector<96x128xf32>
    %61 = arith.addf %56, %60 : vector<96x128xf32>
    %c21_40 = arith.constant 21 : index
    %c0_41 = arith.constant 0 : index
    %62 = vector.load %arg7[%c21_40, %c0_41] : memref<120x128xf32, #tpu.memory_space<vmem>>, vector<96x128xf32>
    %63 = arith.truncf %62 : vector<96x128xf32> to vector<96x128xbf16>
    %c896 = arith.constant 896 : index
    %c0_42 = arith.constant 0 : index
    %64 = vector.load %arg4[%c896, %c0_42] : memref<1152x128xbf16, #tpu.memory_space<vmem>>, vector<128x128xbf16>
    %cst_43 = arith.constant dense<0.000000e+00> : vector<96x128xf32>
    %65 = tpu.matmul %63, %64, %cst_43 {dimension_numbers = #tpu.dot_dimension_numbers<[1], [0], [0], [1], [0, 0, 1, 1], [], []>} : vector<96x128xbf16>, vector<128x128xbf16>, vector<96x128xf32> -> vector<96x128xf32>
    %66 = arith.addf %61, %65 : vector<96x128xf32>
    %c22 = arith.constant 22 : index
    %c0_44 = arith.constant 0 : index
    %67 = vector.load %arg7[%c22, %c0_44] : memref<120x128xf32, #tpu.memory_space<vmem>>, vector<96x128xf32>
    %68 = arith.truncf %67 : vector<96x128xf32> to vector<96x128xbf16>
    %c1024 = arith.constant 1024 : index
    %c0_45 = arith.constant 0 : index
    %69 = vector.load %arg4[%c1024, %c0_45] : memref<1152x128xbf16, #tpu.memory_space<vmem>>, vector<128x128xbf16>
    %cst_46 = arith.constant dense<0.000000e+00> : vector<96x128xf32>
    %70 = tpu.matmul %68, %69, %cst_46 {dimension_numbers = #tpu.dot_dimension_numbers<[1], [0], [0], [1], [0, 0, 1, 1], [], []>} : vector<96x128xbf16>, vector<128x128xbf16>, vector<96x128xf32> -> vector<96x128xf32>
    %71 = arith.addf %66, %70 : vector<96x128xf32>
    %72 = vector.extract_strided_slice %71 {offsets = [0, 0], sizes = [8, 128], strides = [1, 1]} : vector<96x128xf32> to vector<8x128xf32>
    %73 = vector.extract_strided_slice %71 {offsets = [10, 0], sizes = [8, 128], strides = [1, 1]} : vector<96x128xf32> to vector<8x128xf32>
    %74 = vector.extract_strided_slice %71 {offsets = [20, 0], sizes = [8, 128], strides = [1, 1]} : vector<96x128xf32> to vector<8x128xf32>
    %75 = vector.extract_strided_slice %71 {offsets = [30, 0], sizes = [8, 128], strides = [1, 1]} : vector<96x128xf32> to vector<8x128xf32>
    %76 = vector.extract_strided_slice %71 {offsets = [40, 0], sizes = [8, 128], strides = [1, 1]} : vector<96x128xf32> to vector<8x128xf32>
    %77 = vector.extract_strided_slice %71 {offsets = [50, 0], sizes = [8, 128], strides = [1, 1]} : vector<96x128xf32> to vector<8x128xf32>
    %78 = vector.extract_strided_slice %71 {offsets = [60, 0], sizes = [8, 128], strides = [1, 1]} : vector<96x128xf32> to vector<8x128xf32>
    %79 = vector.extract_strided_slice %71 {offsets = [70, 0], sizes = [8, 128], strides = [1, 1]} : vector<96x128xf32> to vector<8x128xf32>
    %80 = tpu.concatenate %72, %73, %74, %75, %76, %77, %78, %79 in 0 : vector<8x128xf32>, vector<8x128xf32>, vector<8x128xf32>, vector<8x128xf32>, vector<8x128xf32>, vector<8x128xf32>, vector<8x128xf32>, vector<8x128xf32> -> vector<64x128xf32>
    %81 = arith.truncf %80 : vector<64x128xf32> to vector<64x128xbf16>
    %c0_47 = arith.constant 0 : index
    %c0_48 = arith.constant 0 : index
    %82 = vector.load %arg5[%c0_47, %c0_48] : memref<64x128xbf16, #tpu.memory_space<vmem>>, vector<64x128xbf16>
    tpu.vector_store %arg5[%c0_47, %c0_48], %81 {strides = array<i32>} : memref<64x128xbf16, #tpu.memory_space<vmem>>, vector<64x128xbf16>,
    %cst_49 = arith.constant dense<0.000000e+00> : vector<128xf32>
    %83 = vector.multi_reduction <add>, %80, %cst_49 [0] : vector<64x128xf32> to vector<128xf32>
    %84 = vector.shape_cast %83 : vector<128xf32> to vector<1x128xf32>
    %85 = arith.mulf %80, %80 : vector<64x128xf32>
    %cst_50 = arith.constant dense<0.000000e+00> : vector<128xf32>
    %86 = vector.multi_reduction <add>, %85, %cst_50 [0] : vector<64x128xf32> to vector<128xf32>
    %87 = vector.shape_cast %86 : vector<128xf32> to vector<1x128xf32>
    %88 = tpu.concatenate %84, %87 in 0 : vector<1x128xf32>, vector<1x128xf32> -> vector<2x128xf32>
    %89 = vector.shape_cast %88 : vector<2x128xf32> to vector<1x2x128xf32>
    %c0_51 = arith.constant 0 : index
    %c0_52 = arith.constant 0 : index
    %c0_53 = arith.constant 0 : index
    %90 = vector.load %arg6[%c0_51, %c0_52, %c0_53] : memref<1x2x128xf32, #tpu.memory_space<vmem>>, vector<1x2x128xf32>
    tpu.vector_store %arg6[%c0_51, %c0_52, %c0_53], %89 {strides = array<i32>} : memref<1x2x128xf32, #tpu.memory_space<vmem>>, vector<1x2x128xf32>,
    return
  }
  func.func @transform_0(%arg0: i32) -> (i32, i32) {
    %c0_i32 = arith.constant 0 : i32
    %c0_i32_0 = arith.constant 0 : i32
    return %arg0, %c0_i32 : i32, i32
  }
  func.func @transform_1(%arg0: i32) -> (i32, i32) {
    %c0_i32 = arith.constant 0 : i32
    %c0_i32_0 = arith.constant 0 : i32
    %c0_i32_1 = arith.constant 0 : i32
    return %c0_i32, %c0_i32_0 : i32, i32
  }
  func.func @transform_2(%arg0: i32) -> (i32, i32) {
    %c0_i32 = arith.constant 0 : i32
    %c0_i32_0 = arith.constant 0 : i32
    %c0_i32_1 = arith.constant 0 : i32
    return %c0_i32, %c0_i32_0 : i32, i32
  }
  func.func @transform_3(%arg0: i32) -> (i32, i32) {
    %c0_i32 = arith.constant 0 : i32
    %c0_i32_0 = arith.constant 0 : i32
    %c0_i32_1 = arith.constant 0 : i32
    return %c0_i32, %c0_i32_0 : i32, i32
  }
  func.func @transform_4(%arg0: i32) -> (i32, i32) {
    %c0_i32 = arith.constant 0 : i32
    %c0_i32_0 = arith.constant 0 : i32
    return %arg0, %c0_i32 : i32, i32
  }
  func.func @transform_5(%arg0: i32) -> (i32, i32, i32) {
    %c0_i32 = arith.constant 0 : i32
    %c0_i32_0 = arith.constant 0 : i32
    %c0_i32_1 = arith.constant 0 : i32
    return %arg0, %c0_i32, %c0_i32_0 : i32, i32, i32
  }
}

module attributes {stable_mosaic.version = 11 : i64} {
  func.func @_finalize_kernel(%arg0: i32, %arg1: memref<64x128xbf16, #tpu.memory_space<vmem>>, %arg2: memref<64x128xbf16, #tpu.memory_space<vmem>>, %arg3: memref<1x128xf32, #tpu.memory_space<vmem>>, %arg4: memref<1x128xf32, #tpu.memory_space<vmem>>, %arg5: memref<64x128xf32, #tpu.memory_space<vmem>>) attributes {dimension_semantics = [#tpu.dimension_semantics<parallel>], iteration_bounds = array<i64: 2>, scalar_prefetch = 0 : i64, scratch_operands = 0 : i64, tpu.core_type = #tpu.core_type<tc>, window_params = [{transform_indices = @transform_0, window_bounds = array<i64: 64, 128>}, {transform_indices = @transform_1, window_bounds = array<i64: 64, 128>}, {pipeline_mode = #tpu.pipeline_mode<synchronous>, transform_indices = @transform_2, window_bounds = array<i64: 1, 128>}, {pipeline_mode = #tpu.pipeline_mode<synchronous>, transform_indices = @transform_3, window_bounds = array<i64: 1, 128>}, {transform_indices = @transform_4, window_bounds = array<i64: 64, 128>}]} {
    %c0 = arith.constant 0 : index
    %c0_0 = arith.constant 0 : index
    %0 = vector.load %arg1[%c0, %c0_0] : memref<64x128xbf16, #tpu.memory_space<vmem>>, vector<64x128xbf16>
    %1 = arith.extf %0 : vector<64x128xbf16> to vector<64x128xf32>
    %c0_1 = arith.constant 0 : index
    %c0_2 = arith.constant 0 : index
    %2 = vector.load %arg3[%c0_1, %c0_2] : memref<1x128xf32, #tpu.memory_space<vmem>>, vector<1x128xf32>
    %3 = vector.broadcast %2 : vector<1x128xf32> to vector<64x128xf32>
    %4 = arith.mulf %1, %3 : vector<64x128xf32>
    %c0_3 = arith.constant 0 : index
    %c0_4 = arith.constant 0 : index
    %5 = vector.load %arg4[%c0_3, %c0_4] : memref<1x128xf32, #tpu.memory_space<vmem>>, vector<1x128xf32>
    %6 = vector.broadcast %5 : vector<1x128xf32> to vector<64x128xf32>
    %7 = arith.addf %4, %6 : vector<64x128xf32>
    %c0_5 = arith.constant 0 : index
    %c0_6 = arith.constant 0 : index
    %8 = vector.load %arg2[%c0_5, %c0_6] : memref<64x128xbf16, #tpu.memory_space<vmem>>, vector<64x128xbf16>
    %9 = arith.extf %8 : vector<64x128xbf16> to vector<64x128xf32>
    %10 = arith.addf %7, %9 : vector<64x128xf32>
    %cst = arith.constant 0.000000e+00 : f32
    %11 = vector.broadcast %cst : f32 to vector<64x128xf32>
    %12 = arith.maximumf %10, %11 : vector<64x128xf32>
    %c0_7 = arith.constant 0 : index
    %c0_8 = arith.constant 0 : index
    %13 = vector.load %arg5[%c0_7, %c0_8] : memref<64x128xf32, #tpu.memory_space<vmem>>, vector<64x128xf32>
    tpu.vector_store %arg5[%c0_7, %c0_8], %12 {strides = array<i32>} : memref<64x128xf32, #tpu.memory_space<vmem>>, vector<64x128xf32>,
    return
  }
  func.func @transform_0(%arg0: i32) -> (i32, i32) {
    %c0_i32 = arith.constant 0 : i32
    %c0_i32_0 = arith.constant 0 : i32
    return %arg0, %c0_i32 : i32, i32
  }
  func.func @transform_1(%arg0: i32) -> (i32, i32) {
    %c0_i32 = arith.constant 0 : i32
    %c0_i32_0 = arith.constant 0 : i32
    return %arg0, %c0_i32 : i32, i32
  }
  func.func @transform_2(%arg0: i32) -> (i32, i32) {
    %c0_i32 = arith.constant 0 : i32
    %c0_i32_0 = arith.constant 0 : i32
    %c0_i32_1 = arith.constant 0 : i32
    return %c0_i32, %c0_i32_0 : i32, i32
  }
  func.func @transform_3(%arg0: i32) -> (i32, i32) {
    %c0_i32 = arith.constant 0 : i32
    %c0_i32_0 = arith.constant 0 : i32
    %c0_i32_1 = arith.constant 0 : i32
    return %c0_i32, %c0_i32_0 : i32, i32
  }
  func.func @transform_4(%arg0: i32) -> (i32, i32) {
    %c0_i32 = arith.constant 0 : i32
    %c0_i32_0 = arith.constant 0 : i32
    return %arg0, %c0_i32 : i32, i32
  }
}

module attributes {stable_mosaic.version = 11 : i64} {
  func.func @_conv3_kernel(%arg0: i32, %arg1: memref<64x128xbf16, #tpu.memory_space<vmem>>, %arg2: memref<1x128xf32, #tpu.memory_space<vmem>>, %arg3: memref<1x128xf32, #tpu.memory_space<vmem>>, %arg4: memref<128x128xbf16, #tpu.memory_space<vmem>>, %arg5: memref<64x128xbf16, #tpu.memory_space<vmem>>, %arg6: memref<1x2x128xf32, #tpu.memory_space<vmem>>) attributes {dimension_semantics = [#tpu.dimension_semantics<parallel>], iteration_bounds = array<i64: 2>, scalar_prefetch = 0 : i64, scratch_operands = 0 : i64, tpu.core_type = #tpu.core_type<tc>, window_params = [{transform_indices = @transform_0, window_bounds = array<i64: 64, 128>}, {pipeline_mode = #tpu.pipeline_mode<synchronous>, transform_indices = @transform_1, window_bounds = array<i64: 1, 128>}, {pipeline_mode = #tpu.pipeline_mode<synchronous>, transform_indices = @transform_2, window_bounds = array<i64: 1, 128>}, {pipeline_mode = #tpu.pipeline_mode<synchronous>, transform_indices = @transform_3, window_bounds = array<i64: 128, 128>}, {transform_indices = @transform_4, window_bounds = array<i64: 64, 128>}, {transform_indices = @transform_5, window_bounds = array<i64: 1, 2, 128>}]} {
    %c0 = arith.constant 0 : index
    %c0_0 = arith.constant 0 : index
    %0 = vector.load %arg1[%c0, %c0_0] : memref<64x128xbf16, #tpu.memory_space<vmem>>, vector<64x128xbf16>
    %1 = arith.extf %0 : vector<64x128xbf16> to vector<64x128xf32>
    %c0_1 = arith.constant 0 : index
    %c0_2 = arith.constant 0 : index
    %2 = vector.load %arg2[%c0_1, %c0_2] : memref<1x128xf32, #tpu.memory_space<vmem>>, vector<1x128xf32>
    %3 = vector.broadcast %2 : vector<1x128xf32> to vector<64x128xf32>
    %4 = arith.mulf %1, %3 : vector<64x128xf32>
    %c0_3 = arith.constant 0 : index
    %c0_4 = arith.constant 0 : index
    %5 = vector.load %arg3[%c0_3, %c0_4] : memref<1x128xf32, #tpu.memory_space<vmem>>, vector<1x128xf32>
    %6 = vector.broadcast %5 : vector<1x128xf32> to vector<64x128xf32>
    %7 = arith.addf %4, %6 : vector<64x128xf32>
    %cst = arith.constant 0.000000e+00 : f32
    %8 = vector.broadcast %cst : f32 to vector<64x128xf32>
    %9 = arith.maximumf %7, %8 : vector<64x128xf32>
    %10 = arith.truncf %9 : vector<64x128xf32> to vector<64x128xbf16>
    %c0_5 = arith.constant 0 : index
    %c0_6 = arith.constant 0 : index
    %11 = vector.load %arg4[%c0_5, %c0_6] : memref<128x128xbf16, #tpu.memory_space<vmem>>, vector<128x128xbf16>
    %cst_7 = arith.constant dense<0.000000e+00> : vector<64x128xf32>
    %12 = tpu.matmul %10, %11, %cst_7 {dimension_numbers = #tpu.dot_dimension_numbers<[1], [0], [0], [1], [0, 0, 1, 1], [], []>} : vector<64x128xbf16>, vector<128x128xbf16>, vector<64x128xf32> -> vector<64x128xf32>
    %13 = arith.truncf %12 : vector<64x128xf32> to vector<64x128xbf16>
    %c0_8 = arith.constant 0 : index
    %c0_9 = arith.constant 0 : index
    %14 = vector.load %arg5[%c0_8, %c0_9] : memref<64x128xbf16, #tpu.memory_space<vmem>>, vector<64x128xbf16>
    tpu.vector_store %arg5[%c0_8, %c0_9], %13 {strides = array<i32>} : memref<64x128xbf16, #tpu.memory_space<vmem>>, vector<64x128xbf16>,
    %cst_10 = arith.constant dense<0.000000e+00> : vector<128xf32>
    %15 = vector.multi_reduction <add>, %12, %cst_10 [0] : vector<64x128xf32> to vector<128xf32>
    %16 = vector.shape_cast %15 : vector<128xf32> to vector<1x128xf32>
    %17 = arith.mulf %12, %12 : vector<64x128xf32>
    %cst_11 = arith.constant dense<0.000000e+00> : vector<128xf32>
    %18 = vector.multi_reduction <add>, %17, %cst_11 [0] : vector<64x128xf32> to vector<128xf32>
    %19 = vector.shape_cast %18 : vector<128xf32> to vector<1x128xf32>
    %20 = tpu.concatenate %16, %19 in 0 : vector<1x128xf32>, vector<1x128xf32> -> vector<2x128xf32>
    %21 = vector.shape_cast %20 : vector<2x128xf32> to vector<1x2x128xf32>
    %c0_12 = arith.constant 0 : index
    %c0_13 = arith.constant 0 : index
    %c0_14 = arith.constant 0 : index
    %22 = vector.load %arg6[%c0_12, %c0_13, %c0_14] : memref<1x2x128xf32, #tpu.memory_space<vmem>>, vector<1x2x128xf32>
    tpu.vector_store %arg6[%c0_12, %c0_13, %c0_14], %21 {strides = array<i32>} : memref<1x2x128xf32, #tpu.memory_space<vmem>>, vector<1x2x128xf32>,
    return
  }
  func.func @transform_0(%arg0: i32) -> (i32, i32) {
    %c0_i32 = arith.constant 0 : i32
    %c0_i32_0 = arith.constant 0 : i32
    return %arg0, %c0_i32 : i32, i32
  }
  func.func @transform_1(%arg0: i32) -> (i32, i32) {
    %c0_i32 = arith.constant 0 : i32
    %c0_i32_0 = arith.constant 0 : i32
    %c0_i32_1 = arith.constant 0 : i32
    return %c0_i32, %c0_i32_0 : i32, i32
  }
  func.func @transform_2(%arg0: i32) -> (i32, i32) {
    %c0_i32 = arith.constant 0 : i32
    %c0_i32_0 = arith.constant 0 : i32
    %c0_i32_1 = arith.constant 0 : i32
    return %c0_i32, %c0_i32_0 : i32, i32
  }
  func.func @transform_3(%arg0: i32) -> (i32, i32) {
    %c0_i32 = arith.constant 0 : i32
    %c0_i32_0 = arith.constant 0 : i32
    %c0_i32_1 = arith.constant 0 : i32
    return %c0_i32, %c0_i32_0 : i32, i32
  }
  func.func @transform_4(%arg0: i32) -> (i32, i32) {
    %c0_i32 = arith.constant 0 : i32
    %c0_i32_0 = arith.constant 0 : i32
    return %arg0, %c0_i32 : i32, i32
  }
  func.func @transform_5(%arg0: i32) -> (i32, i32, i32) {
    %c0_i32 = arith.constant 0 : i32
    %c0_i32_0 = arith.constant 0 : i32
    %c0_i32_1 = arith.constant 0 : i32
    return %arg0, %c0_i32, %c0_i32_0 : i32, i32, i32
  }
}

</mosaic_0001>

<bundles_post_ra>
// kernel: block_forward.4
= control target key start
LH: loop header
LB: loop body
LE: loop exit
PB: predicated region body
PF: predicated region fallthrough
CT: control target
= control target key end

     0   :  { %s674_s12 = smov 0   ;;  %s736_s0 = inlined_call_operand.vmem [shape: bf16[128,128], index: 0, kind: input, shape index: {}]   ;;  %s737_s1 = inlined_call_operand.vmem [shape: bf16[128,128], index: 1, kind: input, shape index: {}]   ;;  %s738_s2 = inlined_call_operand.vmem [shape: bf16[128,128], index: 2, kind: output, shape index: {0}]   ;;  %s739_s3 = inlined_call_operand.vmem [shape: f32[2,2,128], index: 3, kind: output, shape index: {1}]  }
   0x1 LB: > { %s680_s13 = sadd.s32 4294967295, %s652_s12   ;;  %p515_p0 = scmp.ge.s32.totalorder %s652_s12, 1  ;;  %s652_s12 = sphi %s674_s12, %s14_s12  }
   0x2   : > { %p141_p1 = scmp.lt.s32.totalorder %s652_s12, 3 }
   0x4   : > { %p142_p2 = pnand %p515_p0, %p141_p1 }
   0x5   : > { %v634_v0 = vld [vmem:[%s737_s1] sm:$0xff] (!%p142_p2)   ;;  %s516_s16 = sshll.u32 (!%p142_p2), %s680_s13, 3  ;;  %v635_v1 = vld [vmem:[%s737_s1 + $0x8] sm:$0xff] (!%p142_p2)   ;;  %v636_v2 = vld [vmem:[%s737_s1 + $0x10] sm:$0xff] (!%p142_p2)   ;;  %p181_p4 = scmp.lt.s32.totalorder (!%p142_p2), %s680_s13, 1  ;;  %vm421_vm0 = vcmask (!%p142_p2), 1040384  }
   0x6   : > { %145 = sbr.rel (%p142_p2) target bundleno = 283 (0x11b), region = 28  ;;  %p170_p3 = scmp.lt.s32.totalorder (!%p142_p2), %s516_s16, 15  ;;  %586 = vmatprep.subr.bf16.mxu0 (!%p142_p2), %v634_v0  ;;  %610 = vmatprep.subr.bf16.mxu1 (!%p142_p2), %v634_v0  ;;  %v637_v3 = vld [vmem:[%s737_s1 + $0x18] sm:$0xff] (!%p142_p2)   ;;  %v638_v6 = vld [vmem:[%s737_s1 + $0x20] sm:$0xff] (!%p142_p2)   ;;  %v639_v7 = vld [vmem:[%s737_s1 + $0x28] sm:$0xff] (!%p142_p2)  }
   0x7   : > { %587 = vmatpush3.bf16.msra.mxu0 (!%p142_p2), %v634_v0  ;;  %618 = vmatpush3.bf16.msra.mxu1 (!%p142_p2), %v634_v0  ;;  %v640_v8 = vld [vmem:[%s737_s1 + $0x30] sm:$0xff] (!%p142_p2)   ;;  %v641_v9 = vld [vmem:[%s737_s1 + $0x38] sm:$0xff] (!%p142_p2)  }
   0x8   : > { %588 = vmatprep.subr.bf16.mxu0 (!%p142_p2), %v635_v1  ;;  %611 = vmatprep.subr.bf16.mxu1 (!%p142_p2), %v635_v1 }
   0xb   : > { %589 = vmatpush3.bf16.msra.mxu0 (!%p142_p2), %v635_v1  ;;  %619 = vmatpush3.bf16.msra.mxu1 (!%p142_p2), %v635_v1 }
   0xc   : > { %590 = vmatprep.subr.bf16.mxu0 (!%p142_p2), %v636_v2  ;;  %612 = vmatprep.subr.bf16.mxu1 (!%p142_p2), %v636_v2 }
   0xd   : > { %s741_s16 = smov (!%p170_p3, %s516_s16), 15  ;;  %s743_s13 = smov (!%p181_p4, %s680_s13), 1 }
   0xe   : > { %s517_s21 = sshll.u32 %s741_s16, 2  ;;  %s520_s11 = sshll.u32 %s743_s13, 1 }
   0xf   : > { %s702_s24 = scalar_lea.vmem %s736_s0, %s517_s21  ;;  %591 = vmatpush3.bf16.msra.mxu0 %v636_v2  ;;  %620 = vmatpush3.bf16.msra.mxu1 %v636_v2  ;;  %s179_s10 = scalar_lea.vmem %s738_s2, %s517_s21 }
  0x10   : > { %v642_v4 = vld [vmem:[%s702_s24] sm:$0xff]   ;;  %v644_v5 = vld [vmem:[%s702_s24 + $0x10] sm:$0xff]   ;;  %592 = vmatprep.subr.bf16.mxu0 %v637_v3  ;;  %613 = vmatprep.subr.bf16.mxu1 %v637_v3  ;;  %v643_v10 = vld [vmem:[%s702_s24 + $0x8] sm:$0xff]   ;;  %s184_s16 = scalar_lea.vmem %s739_s3, %s520_s11 }
  0x11   : > { %602 = vmatprep.mubr.bf16.mxu0 %v642_v4  ;;  %606 = vmatprep.mubr.bf16.mxu1 %v644_v5  ;;  %v645_v11 = vld [vmem:[%s702_s24 + $0x18] sm:$0xff]  }
  0x13   : > { %593 = vmatpush3.bf16.msra.mxu0 %v637_v3  ;;  %621 = vmatpush3.bf16.msra.mxu1 %v637_v3 }
  0x14   : > { %594 = vmatprep.subr.bf16.mxu0 %v638_v6  ;;  %614 = vmatprep.subr.bf16.mxu1 %v638_v6 }
  0x17   : > { %595 = vmatpush3.bf16.msra.mxu0 %v638_v6  ;;  %622 = vmatpush3.bf16.msra.mxu1 %v638_v6 }
  0x18   : > { %596 = vmatprep.subr.bf16.mxu0 %v639_v7  ;;  %615 = vmatprep.subr.bf16.mxu1 %v639_v7 }
  0x1b   : > { %597 = vmatpush3.bf16.msra.mxu0 %v639_v7  ;;  %623 = vmatpush3.bf16.msra.mxu1 %v639_v7 }
  0x1c   : > { %598 = vmatprep.subr.bf16.mxu0 %v640_v8  ;;  %616 = vmatprep.subr.bf16.mxu1 %v640_v8 }
  0x1f   : > { %599 = vmatpush3.bf16.msra.mxu0 %v640_v8  ;;  %624 = vmatpush3.bf16.msra.mxu1 %v640_v8 }
  0x20   : > { %600 = vmatprep.subr.bf16.mxu0 %v641_v9  ;;  %617 = vmatprep.subr.bf16.mxu1 %v641_v9 }
  0x23   : > { %601 = vmatpush3.bf16.msra.mxu0 %v641_v9  ;;  %625 = vmatpush3.bf16.msra.mxu1 %v641_v9 }
  0x26   : > { %603 = vmatmul.mubr.bf16.vlgmr.msra.gmra.mrb[0].mxu0 %v643_v10  ;;  %607 = vmatmul.mubr.bf16.vlgmr.msra.gmra.mrb[0].mxu1 %v645_v11 }
  0xf9   : > { %v604_v12 = vpop.f32.mrb[0].mxu0  ;;  %v608_v13 = vpop.f32.mrb[0].mxu1 }
  0xfa   : > { %v316_v14 = vpop.f32.mrb[1].mxu0  ;;  %v332_v15 = vpop.f32.mrb[1].mxu1  ;;  %v402_v27 = vmul.f32 %v604_v12, %v604_v12  ;;  %v406_v39 = vmul.f32 %v608_v13, %v608_v13 }
  0xfb   : > { %v605_v16 = vpop.f32.mrb[2].mxu0  ;;  %v609_v17 = vpop.f32.mrb[2].mxu1  ;;  %v400_v18 = vmul.f32 %v316_v14, %v316_v14  ;;  %v404_v33 = vmul.f32 %v332_v15, %v332_v15 }
  0xfc   : > { %v559_v19 = vpack.c.bf16 %v605_v16, %v604_v12  ;;  %v319_v20 = vpop.f32.mrb[3].mxu0  ;;  %v569_v21 = vpack.c.bf16 %v609_v17, %v608_v13  ;;  %v335_v22 = vpop.f32.mrb[3].mxu1  ;;  %v403_v30 = vmul.f32 %v605_v16, %v605_v16  ;;  %v407_v42 = vmul.f32 %v609_v17, %v609_v17 }
  0xfd   : > { %v554_v23 = vpack.c.bf16 %v319_v20, %v316_v14  ;;  %v387_v24 = vadd.f32 %v319_v20, %v316_v14  ;;  %v401_v25 = vmul.f32 %v319_v20, %v319_v20  ;;  %v564_v26 = vpack.c.bf16 %v335_v22, %v332_v15 }
  0xfe   : > { %571 = vst [vmem:[%s179_s10 + $0x8] sm:$0xff] %v559_v19   ;;  %573 = vst [vmem:[%s179_s10 + $0x18] sm:$0xff] %v569_v21   ;;  %v405_v38 = vmul.f32 %v335_v22, %v335_v22 }
  0xff   : > { %555 = vst [vmem:[%s179_s10] sm:$0xff] %v554_v23   ;;  %v388_v28 = vadd.f32 %v604_v12, %v387_v24  ;;  %v408_v29 = vadd.f32 %v401_v25, %v400_v18  ;;  %572 = vst [vmem:[%s179_s10 + $0x10] sm:$0xff] %v564_v26  }
 0x101   : > { %v409_v31 = vadd.f32 %v408_v29, %v402_v27  ;;  %v389_v32 = vadd.f32 %v605_v16, %v388_v28 }
 0x103   : > { %v390_v34 = vadd.f32 %v389_v32, %v332_v15  ;;  %v410_v35 = vadd.f32 %v409_v31, %v403_v30 }
 0x105   : > { %v411_v36 = vadd.f32 %v410_v35, %v404_v33  ;;  %v391_v37 = vadd.f32 %v390_v34, %v335_v22 }
 0x107   : > { %v392_v40 = vadd.f32 %v608_v13, %v391_v37  ;;  %v412_v41 = vadd.f32 %v411_v36, %v405_v38 }
 0x109   : > { %v393_v43 = vadd.f32 %v609_v17, %v392_v40  ;;  %v413_v44 = vadd.f32 %v412_v41, %v406_v39 }
 0x10b   : > { %v394_v45 = vrot.slane %v393_v43, 4  ;;  %v414_v46 = vadd.f32 %v413_v44, %v407_v42 }
 0x10d   : > { %v395_v47 = vadd.f32 %v394_v45, %v393_v43  ;;  %v415_v48 = vrot.slane %v414_v46, 4 }
 0x10f   : > { %v396_v49 = vrot.slane %v395_v47, 2  ;;  %v416_v50 = vadd.f32 %v415_v48, %v414_v46 }
 0x111   : > { %v397_v51 = vadd.f32 %v396_v49, %v395_v47  ;;  %v417_v52 = vrot.slane %v416_v50, 2 }
 0x113   : > { %v398_v53 = vrot.slane %v397_v51, 1  ;;  %v418_v54 = vadd.f32 %v417_v52, %v416_v50 }
 0x115   : > { %v419_v55 = vrot.slane %v418_v54, 1  ;;  %v399_v56 = vadd.f32 %v398_v53, %v397_v51 }
 0x117   : > { %v420_v57 = vadd.f32 %v419_v55, %v418_v54 }
 0x119   : > { %v422_v58 = vsel %vm421_vm0, %v399_v56, %v420_v57 }
 0x11a   : > { %423 = vst [vmem:[%s184_s16] sm:$0x3] %v422_v58 }
 0x11b PF: > { %s14_s12 = sadd.s32 1, %s652_s12  }
 0x11c   : > { %p11_p5 = scmp.ge.s32.totalorder %s14_s12, 4  }
 0x11e   :  { %13 = sbr.rel (!%p11_p5) target bundleno = 1 (0x1), region = 70 }

// kernel: block_forward.7
= control target key start
LH: loop header
LB: loop body
LE: loop exit
PB: predicated region body
PF: predicated region fallthrough
CT: control target
= control target key end

     0   :  { %9 = vsyncpa [#allocation3], 0  ;;  %s698_s0 = inlined_call_operand.vmem [shape: bf16[128,128], index: 0, kind: input, shape index: {}]   ;;  %s699_s1 = inlined_call_operand.vmem [shape: bf16[128,128], index: 1, kind: input, shape index: {}]   ;;  %s700_s2 = inlined_call_operand.vmem [shape: f32[1,128], index: 2, kind: input, shape index: {}]   ;;  %s701_s3 = inlined_call_operand.vmem [shape: f32[1,128], index: 3, kind: input, shape index: {}]   ;;  %s702_s4 = inlined_call_operand.hbm [shape: f32[128,128], index: 4, kind: output, shape index: {}]  }
   0x1   :  { %11 = vsyncpa [#allocation3 + $0x1], 0  ;;  %s583_s15 = smov 0   ;;  %s585_s16 = smov 0  }
   0x2   :  { %s587_s17 = smov 0   ;;  %s589_s18 = smov 0  }
   0x3 LB: > { %s604_s19 = sadd.s32 4294967295, %s553_s18   ;;  %s395_s20 = sadd.s32 4294967294, %s553_s18   ;;  %s553_s18 = sphi %s589_s18, %s708_s18   ;;  %s549_s17 = sphi %s587_s17, %s707_s17   ;;  %s545_s16 = sphi %s585_s16, %s706_s16   ;;  %s541_s15 = sphi %s583_s15, %s705_s15  }
   0x4   : > { %s608_s21 = sadd.s32 1, %s553_s18   ;;  %s118_s22 = sadd.s32 1, %s549_s17 }
   0x5   : > { %s115_s23 = ssub.s32 %s553_s18, %s608_s21  ;;  %p128_p0 = scmp.ne.s32.totalorder %s549_s17, %s545_s16 }
   0x6   : > { %p116_p1 = scmp.eq.s32.totalorder %s115_s23, 0  ;;  %p129_p2 = scmp.eq.s32.totalorder %s604_s19, 1 }
   0x7   : > { %p134_p3 = scmp.ne.s32.totalorder %s545_s16, %s541_s15  ;;  %p135_p4 = scmp.eq.s32.totalorder %s395_s20, 1 }
   0x8   : > { %s619_s24 = scalar_select %p116_p1, %s549_s17, %s118_s22  }
   0x9   : > { %p621_p5 = por %p129_p2, %p128_p0  ;;  %p625_p6 = por %p135_p4, %p134_p3 }
   0xa   : > { %p398_p7 = scmp.ge.s32.totalorder %s553_s18, 1  ;;  %p177_p8 = scmp.lt.s32.totalorder %s553_s18, 3 }
   0xc   : > { %p178_p9 = pnand %p398_p7, %p177_p8 }
   0xd   : > { %s400_s27 = sshll.u32 (!%p178_p9), %s604_s19, 3  ;;  %v404_v0 = vld [vmem:[%s700_s2] ss:$0 sm:$0xff] (!%p178_p9)  ;;  %s205_s11 = sand.u32 (!%p178_p9), 1, %s545_s16  }
   0xe   : > { %181 = sbr.rel (%p178_p9) target bundleno = 57 (0x39), region = 36  ;;  %p209_p10 = scmp.lt.s32.totalorder (!%p178_p9), %s400_s27, 15  ;;  %v405_v11 = vld [vmem:[%s701_s3] ss:$0 sm:$0xff] (!%p178_p9) }
   0xf   : > { %s399_s14 = sshll.u32 (!%p178_p9), %s205_s11, 6  ;;  %s411_s23 = sshll.u32 (!%p178_p9), %s604_s19, 10 }
  0x10   : > { %s207_s20 = scalar_lea.vmem (!%p178_p9), [#allocation2], %s399_s14  ;;  %s653_s29 = scalar_lea.hbm (!%p178_p9), %s702_s4, %s411_s23 }
  0x11   : > { %s321_s22 = sshll.u32 (!%p178_p9), %s207_s20, 4  ;;  %s657_s30 = scalar_lea.sflag (!%p178_p9), [#allocation3], %s205_s11  ;;  %s648_s22 = int_to_ptr.vmem [resolvable:$true] %s321_s22 }
  0x12   : > { %s491_s19 = scalar_lea.vmem (!%p178_p9), %s648_s22, 1024 }
  0x13   : > { %p492_p11 = scmp.ne.s32.totalorder (!%p178_p9), %s648_s22, %s491_s19 }
  0x15   : > { %s710_s27 = smov (!%p209_p10, %s400_s27), 15  ;;  %p493_p12 = pnand %p492_p11, %p621_p5 }
  0x16   : > { %s401_s28 = sshll.u32 %s710_s27, 2 }
  0x17   : > { %s212_s5 = scalar_lea.vmem %s698_s0, %s401_s28  ;;  %s218_s8 = scalar_lea.vmem %s699_s1, %s401_s28 }
  0x18   : > { %v413_v1 = vld [vmem:[%s212_s5] sm:$0xff]   ;;  %v444_v3 = vld [vmem:[%s212_s5 + $0x8] sm:$0xff]   ;;  %v445_v9 = vld [vmem:[%s212_s5 + $0x10] sm:$0xff]   ;;  %p494_p13 = pneg %p493_p12 }
  0x19   : > { %v429_v2 = vld [vmem:[%s218_s8] sm:$0xff]   ;;  %v414_v4 = vunpack.c.l.bf16 %v413_v1  ;;  %v415_v6 = vunpack.c.h.bf16 %v413_v1  ;;  %v447_v8 = vld [vmem:[%s218_s8 + $0x8] sm:$0xff]   ;;  %v448_v10 = vld [vmem:[%s218_s8 + $0x10] sm:$0xff]   ;;  %v418_v12 = vunpack.c.l.bf16 %v444_v3  ;;  %v419_v14 = vunpack.c.h.bf16 %v444_v3 }
  0x1a   : > { %v430_v5 = vunpack.c.l.bf16 %v429_v2  ;;  %v431_v7 = vunpack.c.h.bf16 %v429_v2  ;;  %v434_v13 = vunpack.c.l.bf16 %v447_v8  ;;  %v435_v15 = vunpack.c.h.bf16 %v447_v8  ;;  %v446_v16 = vld [vmem:[%s212_s5 + $0x18] sm:$0xff]   ;;  %s555_s5 = smov [#allocation2]  }
  0x1b   : > { %v244_v17 = vmul.f32 %v414_v4, %v404_v0  ;;  %v245_v18 = vmul.f32 %v415_v6, %v404_v0  ;;  %v422_v19 = vunpack.c.l.bf16 %v445_v9  ;;  %v438_v20 = vunpack.c.l.bf16 %v448_v10  ;;  %v449_v21 = vld [vmem:[%s218_s8 + $0x18] sm:$0xff]   ;;  %s495_s6 = sshll.u32 %s555_s5, 4  ;;  %s496_s6 = int_to_ptr.vmem [resolvable:$false] %s495_s6 }
  0x1c   : > { %v246_v22 = vmul.f32 %v418_v12, %v404_v0  ;;  %v247_v23 = vmul.f32 %v419_v14, %v404_v0  ;;  %v423_v24 = vunpack.c.h.bf16 %v445_v9  ;;  %v439_v25 = vunpack.c.h.bf16 %v448_v10  ;;  %s497_s7 = scalar_lea.vmem %s496_s6, 2048  ;;  %p498_p0 = scmp.lt.s32.totalorder %s648_s22, %s496_s6 }
  0x1d   : > { %v259_v26 = vadd.f32 %v405_v11, %v244_v17  ;;  %v260_v27 = vadd.f32 %v405_v11, %v245_v18  ;;  %v248_v28 = vmul.f32 %v422_v19, %v404_v0  ;;  %v426_v29 = vunpack.c.l.bf16 %v446_v16  ;;  %p499_p1 = scmp.lt.s32.totalorder %s497_s7, %s491_s19 }
  0x1e   : > { %v261_v30 = vadd.f32 %v405_v11, %v246_v22  ;;  %v262_v31 = vadd.f32 %v405_v11, %v247_v23  ;;  %v249_v32 = vmul.f32 %v423_v24, %v404_v0  ;;  %v442_v33 = vunpack.c.l.bf16 %v449_v21 }
  0x1f   : > { %v283_v34 = vadd.f32 %v430_v5, %v259_v26  ;;  %v284_v35 = vadd.f32 %v431_v7, %v260_v27  ;;  %v263_v36 = vadd.f32 %v405_v11, %v248_v28  ;;  %v250_v37 = vmul.f32 %v426_v29, %v404_v0  ;;  %p500_p2 = por %p499_p1, %p498_p0 }
  0x20   : > { %v285_v38 = vadd.f32 %v434_v13, %v261_v30  ;;  %v286_v39 = vadd.f32 %v435_v15, %v262_v31  ;;  %v264_v40 = vadd.f32 %v405_v11, %v249_v32  ;;  %v427_v41 = vunpack.c.h.bf16 %v446_v16 }
  0x21   : > { %v291_v42 = vmax.f32 %v283_v34, 0.0  ;;  %v292_v43 = vmax.f32 %v284_v35, 0.0  ;;  %v287_v44 = vadd.f32 %v438_v20, %v263_v36  ;;  %v265_v45 = vadd.f32 %v405_v11, %v250_v37  ;;  %p501_p3 = pnand %p500_p2, %p494_p13 }
  0x22   : > { %v293_v46 = vmax.f32 %v285_v38, 0.0  ;;  %v294_v47 = vmax.f32 %v286_v39, 0.0  ;;  %v288_v48 = vadd.f32 %v439_v25, %v264_v40  ;;  %v251_v49 = vmul.f32 %v427_v41, %v404_v0 }
  0x23   : > { %299 = vst [vmem:[%s207_s20] sm:$0xff] %v291_v42  ;;  %300 = vst [vmem:[%s207_s20 + $0x8] sm:$0xff] %v292_v43  ;;  %v295_v50 = vmax.f32 %v287_v44, 0.0  ;;  %v289_v51 = vadd.f32 %v442_v33, %v265_v45  ;;  %v443_v52 = vunpack.c.h.bf16 %v449_v21 }
  0x24   : > { %301 = vst [vmem:[%s207_s20 + $0x10] sm:$0xff] %v293_v46  ;;  %302 = vst [vmem:[%s207_s20 + $0x18] sm:$0xff] %v294_v47  ;;  %v296_v53 = vmax.f32 %v288_v48, 0.0  ;;  %v266_v54 = vadd.f32 %v405_v11, %v251_v49 }
  0x25   : > { %303 = vst [vmem:[%s207_s20 + $0x20] sm:$0xff] %v295_v50  ;;  %v297_v55 = vmax.f32 %v289_v51, 0.0 }
  0x26   : > { %304 = vst [vmem:[%s207_s20 + $0x28] sm:$0xff] %v296_v53  ;;  %v290_v56 = vadd.f32 %v443_v52, %v266_v54 }
  0x27   : > { %305 = vst [vmem:[%s207_s20 + $0x30] sm:$0xff] %v297_v55 }
  0x28   : > { %v298_v57 = vmax.f32 %v290_v56, 0.0 }
  0x2a   : > { %306 = vst [vmem:[%s207_s20 + $0x38] sm:$0xff] %v298_v57 }
  0x2b   : > { %504 = shalt.err (!%p501_p3)
}
  0x2c   : > { %s505_s8 = scalar_lea.hbm %s653_s29, 1024  ;;  %s509_s11 = scalar_lea.hbm %s702_s4, 2048 }
  0x2d   : > { %p506_p4 = scmp.ne.s32.totalorder %s653_s29, %s505_s8  ;;  %p510_p9 = scmp.lt.u32.totalorder %s653_s29, %s702_s4 }
  0x2e   : > { %p511_p10 = scmp.lt.u32.totalorder %s509_s11, %s505_s8  ;;  %p513_p12 = scmp.lt.u32.totalorder %s505_s8, %s653_s29 }
  0x2f   : > { %p507_p7 = pnand %p506_p4, %p621_p5 }
  0x30   : > { %p512_p11 = por %p511_p10, %p510_p9 }
  0x31   : > { %p508_p8 = pneg %p507_p7 }
  0x32   : > { %p514_p13 = por %p513_p12, %p512_p11 }
  0x34   : > { %p515_p0 = pnand %p514_p13, %p508_p8 }
  0x36   : > { %518 = shalt.err (!%p515_p0)
}
  0x37   : > { %s556_s14 = smov 128   ;;  %s557_s20 = smov 8  }
  0x38   : > { %450 = dma.vmem_to_hbm [thread:$0]  (%p621_p5), %s648_s22, 1024, %s653_s29, %s657_s30, %s556_s14, %s556_s14, %s557_s20  }
  0x39 PF: > { %p456_p1 = scmp.ge.s32.totalorder %s553_s18, 2  ;;  %s336_s23 = sand.u32 1, %s541_s15  }
  0x3a   : > { %s337_s27 = scalar_lea.sflag [#allocation3], %s336_s23 }
  0x3b   : > { %p453_p2 = pnand %p456_p1, %p625_p6 }
  0x3d   : > { %536 = dma.done.wait (!%p453_p2), %s337_s27, 1024  }
  0x3e   : > { %538 = vsyncadd (!%p453_p2), %s337_s27, 4294966272  ;;  %p14_p3 = scmp.ge.s32.totalorder %s608_s21, 4   ;;  %s705_s15 = smov %s545_s16 }
  0x3f   : > { %s706_s16 = smov %s549_s17  ;;  %s707_s17 = smov %s619_s24 }
  0x40   : > { %s708_s18 = smov %s608_s21  ;;  %16 = sbr.rel (!%p14_p3) target bundleno = 3 (0x3), region = 74 }
  0x47   :  { %342 = vsyncpa [#allocation3], 1 }
  0x48   :  { %344 = vsyncpa [#allocation3 + $0x1], 1 }

// kernel: block_forward.6
= control target key start
LH: loop header
LB: loop body
LE: loop exit
PB: predicated region body
PF: predicated region fallthrough
CT: control target
= control target key end

     0   :  { %s777_s18 = smov 0   ;;  %s839_s0 = inlined_call_operand.vmem [shape: bf16[128,128], index: 0, kind: input, shape index: {}]   ;;  %s840_s1 = inlined_call_operand.vmem [shape: f32[1,128], index: 1, kind: input, shape index: {}]   ;;  %s841_s2 = inlined_call_operand.vmem [shape: f32[1,128], index: 2, kind: input, shape index: {}]   ;;  %s842_s3 = inlined_call_operand.vmem [shape: bf16[128,128], index: 3, kind: input, shape index: {}]   ;;  %s843_s4 = inlined_call_operand.vmem [shape: bf16[128,128], index: 4, kind: output, shape index: {0}]   ;;  %s844_s5 = inlined_call_operand.vmem [shape: f32[2,2,128], index: 5, kind: output, shape index: {1}]  }
   0x1 LB: > { %s783_s19 = sadd.s32 4294967295, %s745_s18   ;;  %p595_p0 = scmp.ge.s32.totalorder %s745_s18, 1  ;;  %s745_s18 = sphi %s777_s18, %s16_s18  }
   0x2   : > { %p191_p1 = scmp.lt.s32.totalorder %s745_s18, 3 }
   0x4   : > { %p192_p2 = pnand %p595_p0, %p191_p1 }
   0x5   : > { %v731_v0 = vld [vmem:[%s842_s3] sm:$0xff] (!%p192_p2)   ;;  %s596_s22 = sshll.u32 (!%p192_p2), %s783_s19, 3  ;;  %v732_v1 = vld [vmem:[%s842_s3 + $0x8] sm:$0xff] (!%p192_p2)   ;;  %v733_v2 = vld [vmem:[%s842_s3 + $0x10] sm:$0xff] (!%p192_p2)   ;;  %p235_p4 = scmp.lt.s32.totalorder (!%p192_p2), %s783_s19, 1  ;;  %vm501_vm0 = vcmask (!%p192_p2), 1040384  }
   0x6   : > { %195 = sbr.rel (%p192_p2) target bundleno = 284 (0x11c), region = 36  ;;  %p224_p3 = scmp.lt.s32.totalorder (!%p192_p2), %s596_s22, 15  ;;  %683 = vmatprep.subr.bf16.mxu0 (!%p192_p2), %v731_v0  ;;  %707 = vmatprep.subr.bf16.mxu1 (!%p192_p2), %v731_v0  ;;  %v734_v3 = vld [vmem:[%s842_s3 + $0x18] sm:$0xff] (!%p192_p2)   ;;  %v601_v5 = vld [vmem:[%s840_s1] ss:$0 sm:$0xff] (!%p192_p2)  ;;  %v736_v29 = vld [vmem:[%s842_s3 + $0x28] sm:$0xff] (!%p192_p2)  }
   0x7   : > { %684 = vmatpush3.bf16.msra.mxu0 (!%p192_p2), %v731_v0  ;;  %715 = vmatpush3.bf16.msra.mxu1 (!%p192_p2), %v731_v0  ;;  %v602_v9 = vld [vmem:[%s841_s2] ss:$0 sm:$0xff] (!%p192_p2)  ;;  %v737_v38 = vld [vmem:[%s842_s3 + $0x30] sm:$0xff] (!%p192_p2)   ;;  %v738_v43 = vld [vmem:[%s842_s3 + $0x38] sm:$0xff] (!%p192_p2)  }
   0x8   : > { %685 = vmatprep.subr.bf16.mxu0 (!%p192_p2), %v732_v1  ;;  %708 = vmatprep.subr.bf16.mxu1 (!%p192_p2), %v732_v1  ;;  %v735_v16 = vld [vmem:[%s842_s3 + $0x20] sm:$0xff] (!%p192_p2)  }
   0xb   : > { %686 = vmatpush3.bf16.msra.mxu0 (!%p192_p2), %v732_v1  ;;  %716 = vmatpush3.bf16.msra.mxu1 (!%p192_p2), %v732_v1 }
   0xc   : > { %687 = vmatprep.subr.bf16.mxu0 (!%p192_p2), %v733_v2  ;;  %709 = vmatprep.subr.bf16.mxu1 (!%p192_p2), %v733_v2 }
   0xd   : > { %s846_s22 = smov (!%p224_p3, %s596_s22), 15  ;;  %s848_s19 = smov (!%p235_p4, %s783_s19), 1 }
   0xe   : > { %s597_s27 = sshll.u32 %s846_s22, 2  ;;  %s600_s22 = sshll.u32 %s848_s19, 1 }
   0xf   : > { %s227_s30 = scalar_lea.vmem %s839_s0, %s597_s27  ;;  %688 = vmatpush3.bf16.msra.mxu0 %v733_v2  ;;  %717 = vmatpush3.bf16.msra.mxu1 %v733_v2  ;;  %s233_s25 = scalar_lea.vmem %s843_s4, %s597_s27 }
  0x10   : > { %v630_v4 = vld [vmem:[%s227_s30] sm:$0xff]   ;;  %v666_v8 = vld [vmem:[%s227_s30 + $0x10] sm:$0xff]   ;;  %v665_v10 = vld [vmem:[%s227_s30 + $0x8] sm:$0xff]   ;;  %689 = vmatprep.subr.bf16.mxu0 %v734_v3  ;;  %710 = vmatprep.subr.bf16.mxu1 %v734_v3  ;;  %s238_s28 = scalar_lea.vmem %s844_s5, %s600_s22 }
  0x11   : > { %v631_v6 = vunpack.c.l.bf16 %v630_v4  ;;  %v632_v7 = vunpack.c.h.bf16 %v630_v4  ;;  %v639_v11 = vunpack.c.l.bf16 %v666_v8  ;;  %v640_v12 = vunpack.c.h.bf16 %v666_v8  ;;  %v667_v15 = vld [vmem:[%s227_s30 + $0x18] sm:$0xff]  }
  0x12   : > { %v635_v20 = vunpack.c.l.bf16 %v665_v10  ;;  %v636_v22 = vunpack.c.h.bf16 %v665_v10  ;;  %v643_v24 = vunpack.c.l.bf16 %v667_v15  ;;  %v644_v25 = vunpack.c.h.bf16 %v667_v15 }
  0x13   : > { %v263_v13 = vmul.f32 %v631_v6, %v601_v5  ;;  %v264_v14 = vmul.f32 %v632_v7, %v601_v5  ;;  %v267_v17 = vmul.f32 %v639_v11, %v601_v5  ;;  %v268_v21 = vmul.f32 %v640_v12, %v601_v5  ;;  %690 = vmatpush3.bf16.msra.mxu0 %v734_v3 }
  0x14   : > { %718 = vmatpush3.bf16.msra.mxu1 %v734_v3  ;;  %691 = vmatprep.subr.bf16.mxu0 %v735_v16  ;;  %v265_v33 = vmul.f32 %v635_v20, %v601_v5  ;;  %v266_v34 = vmul.f32 %v636_v22, %v601_v5  ;;  %v269_v35 = vmul.f32 %v643_v24, %v601_v5 }
  0x15   : > { %v278_v18 = vadd.f32 %v602_v9, %v263_v13  ;;  %v279_v19 = vadd.f32 %v602_v9, %v264_v14  ;;  %v282_v23 = vadd.f32 %v602_v9, %v267_v17  ;;  %v283_v28 = vadd.f32 %v602_v9, %v268_v21  ;;  %711 = vmatprep.subr.bf16.mxu1 %v735_v16 }
  0x16   : > { %v270_v36 = vmul.f32 %v644_v25, %v601_v5  ;;  %v280_v39 = vadd.f32 %v602_v9, %v265_v33  ;;  %v281_v40 = vadd.f32 %v602_v9, %v266_v34  ;;  %v284_v41 = vadd.f32 %v602_v9, %v269_v35 }
  0x17   : > { %v286_v26 = vmax.f32 %v278_v18, 0.0  ;;  %v287_v27 = vmax.f32 %v279_v19, 0.0  ;;  %v290_v30 = vmax.f32 %v282_v23, 0.0  ;;  %v291_v32 = vmax.f32 %v283_v28, 0.0  ;;  %692 = vmatpush3.bf16.msra.mxu0 %v735_v16 }
  0x18   : > { %719 = vmatpush3.bf16.msra.mxu1 %v735_v16  ;;  %693 = vmatprep.subr.bf16.mxu0 %v736_v29  ;;  %v285_v42 = vadd.f32 %v602_v9, %v270_v36  ;;  %v288_v44 = vmax.f32 %v280_v39, 0.0  ;;  %v289_v45 = vmax.f32 %v281_v40, 0.0  ;;  %v292_v46 = vmax.f32 %v284_v41, 0.0 }
  0x19   : > { %v294_v31 = vpack.c.bf16 %v287_v27, %v286_v26  ;;  %v296_v37 = vpack.c.bf16 %v291_v32, %v290_v30  ;;  %712 = vmatprep.subr.bf16.mxu1 %v736_v29 }
  0x1a   : > { %v293_v47 = vmax.f32 %v285_v42, 0.0  ;;  %v295_v48 = vpack.c.bf16 %v289_v45, %v288_v44 }
  0x1b   : > { %699 = vmatprep.mubr.bf16.mxu0 %v294_v31  ;;  %703 = vmatprep.mubr.bf16.mxu1 %v296_v37 }
  0x1c   : > { %694 = vmatpush3.bf16.msra.mxu0 %v736_v29  ;;  %720 = vmatpush3.bf16.msra.mxu1 %v736_v29  ;;  %v297_v49 = vpack.c.bf16 %v293_v47, %v292_v46 }
  0x1d   : > { %695 = vmatprep.subr.bf16.mxu0 %v737_v38  ;;  %713 = vmatprep.subr.bf16.mxu1 %v737_v38 }
  0x20   : > { %696 = vmatpush3.bf16.msra.mxu0 %v737_v38  ;;  %721 = vmatpush3.bf16.msra.mxu1 %v737_v38 }
  0x21   : > { %697 = vmatprep.subr.bf16.mxu0 %v738_v43  ;;  %714 = vmatprep.subr.bf16.mxu1 %v738_v43 }
  0x24   : > { %698 = vmatpush3.bf16.msra.mxu0 %v738_v43  ;;  %722 = vmatpush3.bf16.msra.mxu1 %v738_v43 }
  0x27   : > { %700 = vmatmul.mubr.bf16.vlgmr.msra.gmra.mrb[0].mxu0 %v295_v48  ;;  %704 = vmatmul.mubr.bf16.vlgmr.msra.gmra.mrb[0].mxu1 %v297_v49 }
  0xfa   : > { %v701_v50 = vpop.f32.mrb[0].mxu0  ;;  %v705_v51 = vpop.f32.mrb[0].mxu1 }
  0xfb   : > { %v396_v52 = vpop.f32.mrb[1].mxu0  ;;  %v412_v53 = vpop.f32.mrb[1].mxu1  ;;  %v482_v1 = vmul.f32 %v701_v50, %v701_v50  ;;  %v486_v13 = vmul.f32 %v705_v51, %v705_v51 }
  0xfc   : > { %v702_v54 = vpop.f32.mrb[2].mxu0  ;;  %v706_v55 = vpop.f32.mrb[2].mxu1  ;;  %v480_v56 = vmul.f32 %v396_v52, %v396_v52  ;;  %v484_v7 = vmul.f32 %v412_v53, %v412_v53 }
  0xfd   : > { %v653_v57 = vpack.c.bf16 %v702_v54, %v701_v50  ;;  %v399_v58 = vpop.f32.mrb[3].mxu0  ;;  %v663_v59 = vpack.c.bf16 %v706_v55, %v705_v51  ;;  %v415_v60 = vpop.f32.mrb[3].mxu1  ;;  %v483_v4 = vmul.f32 %v702_v54, %v702_v54  ;;  %v487_v16 = vmul.f32 %v706_v55, %v706_v55 }
  0xfe   : > { %v648_v61 = vpack.c.bf16 %v399_v58, %v396_v52  ;;  %v467_v62 = vadd.f32 %v399_v58, %v396_v52  ;;  %v481_v63 = vmul.f32 %v399_v58, %v399_v58  ;;  %v658_v0 = vpack.c.bf16 %v415_v60, %v412_v53 }
  0xff   : > { %668 = vst [vmem:[%s233_s25 + $0x8] sm:$0xff] %v653_v57   ;;  %670 = vst [vmem:[%s233_s25 + $0x18] sm:$0xff] %v663_v59   ;;  %v485_v12 = vmul.f32 %v415_v60, %v415_v60 }
 0x100   : > { %649 = vst [vmem:[%s233_s25] sm:$0xff] %v648_v61   ;;  %v468_v2 = vadd.f32 %v701_v50, %v467_v62  ;;  %v488_v3 = vadd.f32 %v481_v63, %v480_v56  ;;  %669 = vst [vmem:[%s233_s25 + $0x10] sm:$0xff] %v658_v0  }
 0x102   : > { %v489_v5 = vadd.f32 %v488_v3, %v482_v1  ;;  %v469_v6 = vadd.f32 %v702_v54, %v468_v2 }
 0x104   : > { %v470_v8 = vadd.f32 %v469_v6, %v412_v53  ;;  %v490_v9 = vadd.f32 %v489_v5, %v483_v4 }
 0x106   : > { %v491_v10 = vadd.f32 %v490_v9, %v484_v7  ;;  %v471_v11 = vadd.f32 %v470_v8, %v415_v60 }
 0x108   : > { %v472_v14 = vadd.f32 %v705_v51, %v471_v11  ;;  %v492_v15 = vadd.f32 %v491_v10, %v485_v12 }
 0x10a   : > { %v473_v17 = vadd.f32 %v706_v55, %v472_v14  ;;  %v493_v18 = vadd.f32 %v492_v15, %v486_v13 }
 0x10c   : > { %v474_v19 = vrot.slane %v473_v17, 4  ;;  %v494_v20 = vadd.f32 %v493_v18, %v487_v16 }
 0x10e   : > { %v475_v21 = vadd.f32 %v474_v19, %v473_v17  ;;  %v495_v22 = vrot.slane %v494_v20, 4 }
 0x110   : > { %v476_v23 = vrot.slane %v475_v21, 2  ;;  %v496_v24 = vadd.f32 %v495_v22, %v494_v20 }
 0x112   : > { %v477_v25 = vadd.f32 %v476_v23, %v475_v21  ;;  %v497_v26 = vrot.slane %v496_v24, 2 }
 0x114   : > { %v478_v27 = vrot.slane %v477_v25, 1  ;;  %v498_v28 = vadd.f32 %v497_v26, %v496_v24 }
 0x116   : > { %v499_v29 = vrot.slane %v498_v28, 1  ;;  %v479_v30 = vadd.f32 %v478_v27, %v477_v25 }
 0x118   : > { %v500_v31 = vadd.f32 %v499_v29, %v498_v28 }
 0x11a   : > { %v502_v32 = vsel %vm501_vm0, %v479_v30, %v500_v31 }
 0x11b   : > { %503 = vst [vmem:[%s238_s28] sm:$0x3] %v502_v32 }
 0x11c PF: > { %s16_s18 = sadd.s32 1, %s745_s18  }
 0x11d   : > { %p13_p5 = scmp.ge.s32.totalorder %s16_s18, 4  }
 0x11f   :  { %15 = sbr.rel (!%p13_p5) target bundleno = 1 (0x1), region = 78 }

// kernel: block_forward.5
= control target key start
LH: loop header
LB: loop body
LE: loop exit
PB: predicated region body
PF: predicated region fallthrough
CT: control target
= control target key end

     0   :  { %s2785_s18 = smov 0   ;;  %s3191_s0 = inlined_call_operand.vmem [shape: bf16[128,128], index: 0, kind: input, shape index: {}]   ;;  %s3192_s1 = inlined_call_operand.vmem [shape: f32[1,128], index: 1, kind: input, shape index: {}]   ;;  %s3193_s2 = inlined_call_operand.vmem [shape: f32[1,128], index: 2, kind: input, shape index: {}]   ;;  %s3194_s3 = inlined_call_operand.vmem [shape: bf16[1152,128], index: 3, kind: input, shape index: {}]   ;;  %s3195_s4 = inlined_call_operand.vmem [shape: bf16[128,128], index: 4, kind: output, shape index: {0}]   ;;  %s3196_s5 = inlined_call_operand.vmem [shape: f32[2,2,128], index: 5, kind: output, shape index: {1}]  }
   0x1 LB: > { %s2791_s19 = sadd.s32 4294967295, %s2752_s18   ;;  %p2039_p0 = scmp.ge.s32.totalorder %s2752_s18, 1  ;;  %s2752_s18 = sphi %s2785_s18, %s16_s18  }
   0x2   : > { %p191_p1 = scmp.lt.s32.totalorder %s2752_s18, 3 }
   0x4   : > { %p192_p2 = pnand %p2039_p0, %p191_p1 }
   0x5   : > { %v2674_v0 = vld [vmem:[%s3194_s3 + $0x40] sm:$0xff] (!%p192_p2)   ;;  %s2040_s22 = sshll.u32 (!%p192_p2), %s2791_s19, 3  ;;  %v2676_v2 = vld [vmem:[%s3194_s3 + $0x48] sm:$0xff] (!%p192_p2)   ;;  %v2754_v4 = vmov (!%p192_p2), 0.0   ;;  %v2678_v5 = vld [vmem:[%s3194_s3 + $0x50] sm:$0xff] (!%p192_p2)   ;;  %vm1844_vm0 = vcmask (!%p192_p2), 1043456  }
   0x6   : > { %195 = sbr.rel (%p192_p2) target bundleno = 417 (0x1a1), region = 36  ;;  %v2675_v1 = vld [vmem:[%s3194_s3 + $0x100] sm:$0xff] (!%p192_p2)   ;;  %p2802_p3 = scmp.lt.s32.totalorder (!%p192_p2), %s2040_s22, 15  ;;  %2305 = vmatprep.subr.bf16.mxu1 (!%p192_p2), %v2674_v0  ;;  %v2677_v3 = vld [vmem:[%s3194_s3 + $0x108] sm:$0xff] (!%p192_p2)   ;;  %240 = vst [vmem:[#allocation2] sm:$0xff] (!%p192_p2), %v2754_v4  ;;  %241 = vst [vmem:[#allocation2 + $0x8] sm:$0xff] (!%p192_p2), %v2754_v4 }
   0x7   : > { %2417 = vmatprep.subr.bf16.mxu0 (!%p192_p2), %v2675_v1  ;;  %2306 = vmatpush3.bf16.msra.mxu1 (!%p192_p2), %v2674_v0  ;;  %242 = vst [vmem:[#allocation2 + $0x10] sm:$0xff] (!%p192_p2), %v2754_v4  ;;  %243 = vst [vmem:[#allocation2 + $0x18] sm:$0xff] (!%p192_p2), %v2754_v4  ;;  %v2679_v6 = vld [vmem:[%s3194_s3 + $0x110] sm:$0xff] (!%p192_p2)   ;;  %v2680_v7 = vld [vmem:[%s3194_s3 + $0x58] sm:$0xff] (!%p192_p2)   ;;  %vm1850_vm1 = vcmask (!%p192_p2), 1041408   ;;  %vm1838_vm2 = vcmask (!%p192_p2), 1045504  }
   0x8   : > { %244 = vst [vmem:[#allocation2 + $0x20] sm:$0xff] (!%p192_p2), %v2754_v4  ;;  %245 = vst [vmem:[#allocation2 + $0x28] sm:$0xff] (!%p192_p2), %v2754_v4  ;;  %2418 = vmatpush3.bf16.msra.mxu0 (!%p192_p2), %v2675_v1  ;;  %2307 = vmatprep.subr.bf16.mxu1 (!%p192_p2), %v2676_v2  ;;  %v2681_v8 = vld [vmem:[%s3194_s3 + $0x118] sm:$0xff] (!%p192_p2)   ;;  %v2682_v9 = vld [vmem:[%s3194_s3 + $0x60] sm:$0xff] (!%p192_p2)   ;;  %p235_p4 = scmp.lt.s32.totalorder (!%p192_p2), %s2791_s19, 1  ;;  %vm1945_vm3 = vcmask (!%p192_p2), 1040384  }
   0x9   : > { %246 = vst [vmem:[#allocation2 + $0x30] sm:$0xff] (!%p192_p2), %v2754_v4  ;;  %247 = vst [vmem:[#allocation2 + $0x38] sm:$0xff] (!%p192_p2), %v2754_v4  ;;  %2419 = vmatprep.subr.bf16.mxu0 (!%p192_p2), %v2677_v3  ;;  %v2683_v10 = vld [vmem:[%s3194_s3 + $0x120] sm:$0xff] (!%p192_p2)   ;;  %v2684_v11 = vld [vmem:[%s3194_s3 + $0x68] sm:$0xff] (!%p192_p2)  }
   0xa   : > { %248 = vst [vmem:[#allocation2 + $0x40] sm:$0xff] (!%p192_p2), %v2754_v4  ;;  %249 = vst [vmem:[#allocation2 + $0x48] sm:$0xff] (!%p192_p2), %v2754_v4  ;;  %v2045_v13 = vld [vmem:[%s3192_s1] ss:$0 sm:$0xff] (!%p192_p2)  ;;  %v2685_v14 = vld [vmem:[%s3194_s3 + $0x128] sm:$0xff] (!%p192_p2)  }
   0xb   : > { %250 = vst [vmem:[#allocation2 + $0x50] sm:$0xff] (!%p192_p2), %v2754_v4  ;;  %251 = vst [vmem:[#allocation2 + $0x58] sm:$0xff] (!%p192_p2), %v2754_v4  ;;  %2308 = vmatpush3.bf16.msra.mxu1 (!%p192_p2), %v2676_v2  ;;  %v2870_v17 = vld [vmem:[%s3193_s2] ss:$0 sm:$0xff] (!%p192_p2)  ;;  %v2686_v21 = vld [vmem:[%s3194_s3 + $0x70] sm:$0xff] (!%p192_p2)  }
   0xc   : > { %252 = vst [vmem:[#allocation2 + $0x60] sm:$0xff] (!%p192_p2), %v2754_v4  ;;  %253 = vst [vmem:[#allocation2 + $0x68] sm:$0xff] (!%p192_p2), %v2754_v4  ;;  %2420 = vmatpush3.bf16.msra.mxu0 (!%p192_p2), %v2677_v3  ;;  %2309 = vmatprep.subr.bf16.mxu1 (!%p192_p2), %v2678_v5  ;;  %v2687_v24 = vld [vmem:[%s3194_s3 + $0x130] sm:$0xff] (!%p192_p2)   ;;  %v2688_v29 = vld [vmem:[%s3194_s3 + $0x78] sm:$0xff] (!%p192_p2)  }
   0xd   : > { %254 = vst [vmem:[#allocation2 + $0x70] sm:$0xff] %v2754_v4  ;;  %s3199_s22 = smov (!%p2802_p3, %s2040_s22), 15  ;;  %2421 = vmatprep.subr.bf16.mxu0 %v2679_v6  ;;  %v2689_v34 = vld [vmem:[%s3194_s3 + $0x138] sm:$0xff]   ;;  %v2690_v38 = vld [vmem:[%s3194_s3] sm:$0xff]   ;;  %v2692_v59 = vld [vmem:[%s3194_s3 + $0x8] sm:$0xff]   ;;  %s3201_s19 = smov (!%p235_p4, %s2791_s19), 1 }
   0xe   : > { %s2041_s13 = sshll.u32 %s3199_s22, 2  ;;  %v2691_v42 = vld [vmem:[%s3194_s3 + $0x140] sm:$0xff]   ;;  %v2693_v3 = vld [vmem:[%s3194_s3 + $0x148] sm:$0xff]   ;;  %s2044_s22 = sshll.u32 %s3201_s19, 1 }
   0xf   : > { %2310 = vmatpush3.bf16.msra.mxu1 %v2678_v5  ;;  %s2855_s23 = scalar_lea.vmem %s3191_s0, %s2041_s13  ;;  %v351_v47 = vld [vmem:[#allocation2 + $0x1] sm:$0xff]  ;;  %s3173_s28 = scalar_lea.vmem %s3195_s4, %s2041_s13 }
  0x10   : > { %2422 = vmatpush3.bf16.msra.mxu0 %v2679_v6  ;;  %2311 = vmatprep.subr.bf16.mxu1 %v2680_v7  ;;  %v2138_v12 = vld [vmem:[%s2855_s23] sm:$0xff]   ;;  %v2173_v20 = vld [vmem:[%s2855_s23 + $0x8] sm:$0xff]   ;;  %v2174_v37 = vld [vmem:[%s2855_s23 + $0x10] sm:$0xff]   ;;  %s238_s30 = scalar_lea.vmem %s3196_s5, %s2044_s22 }
  0x11   : > { %2423 = vmatprep.subr.bf16.mxu0 %v2681_v8  ;;  %v2139_v15 = vunpack.c.l.bf16 %v2138_v12  ;;  %v2140_v16 = vunpack.c.h.bf16 %v2138_v12  ;;  %v2143_v22 = vunpack.c.l.bf16 %v2173_v20  ;;  %v2144_v23 = vunpack.c.h.bf16 %v2173_v20  ;;  %v2175_v41 = vld [vmem:[%s2855_s23 + $0x18] sm:$0xff]   ;;  %v2695_v12 = vld [vmem:[%s3194_s3 + $0x150] sm:$0xff]  }
  0x12   : > { %v2147_v39 = vunpack.c.l.bf16 %v2174_v37  ;;  %v2148_v40 = vunpack.c.h.bf16 %v2174_v37  ;;  %v2151_v45 = vunpack.c.l.bf16 %v2175_v41  ;;  %v2152_v46 = vunpack.c.h.bf16 %v2175_v41 }
  0x13   : > { %2312 = vmatpush3.bf16.msra.mxu1 %v2680_v7  ;;  %v278_v18 = vmul.f32 %v2139_v15, %v2045_v13  ;;  %v279_v19 = vmul.f32 %v2140_v16, %v2045_v13  ;;  %v280_v27 = vmul.f32 %v2143_v22, %v2045_v13  ;;  %v281_v28 = vmul.f32 %v2144_v23, %v2045_v13  ;;  %v2698_v22 = vld [vmem:[%s3194_s3 + $0x20] sm:$0xff]  }
  0x14   : > { %2424 = vmatpush3.bf16.msra.mxu0 %v2681_v8  ;;  %2313 = vmatprep.subr.bf16.mxu1 %v2682_v9  ;;  %v282_v43 = vmul.f32 %v2147_v39, %v2045_v13  ;;  %v283_v44 = vmul.f32 %v2148_v40, %v2045_v13  ;;  %v284_v50 = vmul.f32 %v2151_v45, %v2045_v13  ;;  %v2699_v23 = vld [vmem:[%s3194_s3 + $0x160] sm:$0xff]   ;;  %v2701_v39 = vld [vmem:[%s3194_s3 + $0x168] sm:$0xff]   ;;  %v2705_v45 = vld [vmem:[%s3194_s3 + $0x178] sm:$0xff]  }
  0x15   : > { %2425 = vmatprep.subr.bf16.mxu0 %v2683_v10  ;;  %v293_v25 = vadd.f32 %v2870_v17, %v278_v18  ;;  %v2881_v26 = vadd.f32 %v2870_v17, %v279_v19  ;;  %v295_v32 = vadd.f32 %v2870_v17, %v280_v27  ;;  %v296_v33 = vadd.f32 %v2870_v17, %v281_v28  ;;  %v2697_v18 = vld [vmem:[%s3194_s3 + $0x158] sm:$0xff]  }
  0x16   : > { %v297_v48 = vadd.f32 %v2870_v17, %v282_v43  ;;  %v2904_v49 = vadd.f32 %v2870_v17, %v283_v44  ;;  %v285_v51 = vmul.f32 %v2152_v46, %v2045_v13  ;;  %v299_v60 = vadd.f32 %v2870_v17, %v284_v50  ;;  %v2696_v13 = vld [vmem:[%s3194_s3 + $0x18] sm:$0xff]   ;;  %v2702_v43 = vld [vmem:[%s3194_s3 + $0x30] sm:$0xff]  }
  0x17   : > { %2314 = vmatpush3.bf16.msra.mxu1 %v2682_v9  ;;  %v301_v30 = vmax.f32 %v293_v25, 0.0  ;;  %v302_v31 = vmax.f32 %v2881_v26, 0.0  ;;  %v303_v35 = vmax.f32 %v295_v32, 0.0  ;;  %v304_v36 = vmax.f32 %v296_v33, 0.0  ;;  %v991_v32 = vld [vmem:[#allocation2 + $0x5b] sm:$0xff]  ;;  %v992_v33 = vld [vmem:[#allocation2 + $0x63] sm:$0xff] }
  0x18   : > { %2426 = vmatpush3.bf16.msra.mxu0 %v2683_v10  ;;  %2315 = vmatprep.subr.bf16.mxu1 %v2684_v11  ;;  %v305_v57 = vmax.f32 %v297_v48, 0.0  ;;  %v306_v58 = vmax.f32 %v2904_v49, 0.0  ;;  %v300_v61 = vadd.f32 %v2870_v17, %v285_v51  ;;  %v307_v7 = vmax.f32 %v299_v60, 0.0  ;;  %v2703_v44 = vld [vmem:[%s3194_s3 + $0x170] sm:$0xff]   ;;  %v2706_v48 = vld [vmem:[%s3194_s3 + $0x80] sm:$0xff]   ;;  %v2708_v60 = vld [vmem:[%s3194_s3 + $0x88] sm:$0xff]  }
  0x19   : > { %2427 = vmatprep.subr.bf16.mxu0 %v2685_v14  ;;  %309 = vst [vmem:[#allocation2 + $0xb] sm:$0xff] %v301_v30  ;;  %310 = vst [vmem:[#allocation2 + $0x15] sm:$0xff] %v302_v31  ;;  %v998_v40 = vpack.c.bf16 %v992_v33, %v991_v32  ;;  %v2718_v33 = vld [vmem:[%s3194_s3 + $0xb0] sm:$0xff]   ;;  %v2736_v26 = vld [vmem:[%s3194_s3 + $0xf8] sm:$0xff]  }
  0x1a   : > { %311 = vst [vmem:[#allocation2 + $0x1f] sm:$0xff] %v303_v35  ;;  %312 = vst [vmem:[#allocation2 + $0x29] sm:$0xff] %v304_v36  ;;  %v308_v8 = vmax.f32 %v300_v61, 0.0  ;;  %v2709_v61 = vld [vmem:[%s3194_s3 + $0x188] sm:$0xff]  }
  0x1b   : > { %2316 = vmatpush3.bf16.msra.mxu1 %v2684_v11  ;;  %313 = vst [vmem:[#allocation2 + $0x33] sm:$0xff] %v305_v57  ;;  %314 = vst [vmem:[#allocation2 + $0x3d] sm:$0xff] %v306_v58  ;;  %v2694_v11 = vld [vmem:[%s3194_s3 + $0x10] sm:$0xff]  }
  0x1c   : > { %2428 = vmatpush3.bf16.msra.mxu0 %v2685_v14  ;;  %2317 = vmatprep.subr.bf16.mxu1 %v2686_v21  ;;  %315 = vst [vmem:[#allocation2 + $0x47] sm:$0xff] %v307_v7  ;;  %316 = vst [vmem:[#allocation2 + $0x51] sm:$0xff] %v308_v8 }
  0x1d   : > { %2429 = vmatprep.subr.bf16.mxu0 %v2687_v24 }
  0x1f   : > { %2318 = vmatpush3.bf16.msra.mxu1 %v2686_v21 }
  0x20   : > { %2430 = vmatpush3.bf16.msra.mxu0 %v2687_v24  ;;  %2319 = vmatprep.subr.bf16.mxu1 %v2688_v29  ;;  %v352_v52 = vld [vmem:[#allocation2 + $0x9] sm:$0xff]  ;;  %v982_v53 = vld [vmem:[#allocation2 + $0x13] sm:$0xff] }
  0x21   : > { %2431 = vmatprep.subr.bf16.mxu0 %v2689_v34  ;;  %v363_v54 = vpack.c.bf16 %v352_v52, %v351_v47  ;;  %v993_v55 = vpack.c.bf16 %v982_v53, %v301_v30  ;;  %v353_v56 = vld [vmem:[#allocation2 + $0x11] sm:$0xff]  ;;  %v354_v62 = vld [vmem:[#allocation2 + $0x19] sm:$0xff]  ;;  %v984_v0 = vld [vmem:[#allocation2 + $0x23] sm:$0xff] }
  0x22   : > { %v983_v63 = vld [vmem:[#allocation2 + $0x1b] sm:$0xff]  ;;  %v364_v1 = vpack.c.bf16 %v354_v62, %v353_v56  ;;  %v985_v6 = vld [vmem:[#allocation2 + $0x2b] sm:$0xff] }
  0x23   : > { %2320 = vmatpush3.bf16.msra.mxu1 %v2688_v29  ;;  %2321 = vmatprep.mubr.bf16.mxu1 %v363_v54  ;;  %v994_v2 = vpack.c.bf16 %v984_v0, %v983_v63  ;;  %v355_v5 = vld [vmem:[#allocation2 + $0x21] sm:$0xff]  ;;  %v995_v10 = vpack.c.bf16 %v305_v57, %v985_v6  ;;  %v357_v14 = vld [vmem:[#allocation2 + $0x31] sm:$0xff]  ;;  %v358_v15 = vld [vmem:[#allocation2 + $0x39] sm:$0xff] }
  0x24   : > { %2432 = vmatpush3.bf16.msra.mxu0 %v2689_v34  ;;  %2333 = vmatprep.subr.bf16.mxu1 %v2690_v38  ;;  %v365_v9 = vpack.c.bf16 %v304_v36, %v355_v5  ;;  %v366_v16 = vpack.c.bf16 %v358_v15, %v357_v14  ;;  %v987_v17 = vld [vmem:[#allocation2 + $0x3b] sm:$0xff]  ;;  %v988_v19 = vld [vmem:[#allocation2 + $0x43] sm:$0xff]  ;;  %v989_v27 = vld [vmem:[#allocation2 + $0x4b] sm:$0xff] }
  0x25   : > { %2445 = vmatprep.subr.bf16.mxu0 %v2691_v42  ;;  %2433 = vmatprep.mubr.bf16.mxu0 %v993_v55  ;;  %v359_v20 = vld [vmem:[#allocation2 + $0x41] sm:$0xff]  ;;  %v360_v21 = vld [vmem:[#allocation2 + $0x49] sm:$0xff]  ;;  %v996_v24 = vpack.c.bf16 %v988_v19, %v987_v17  ;;  %v990_v28 = vld [vmem:[#allocation2 + $0x53] sm:$0xff] }
  0x26   : > { %2322 = vmatmul.mubr.bf16.vlgmr.msra.gmra.mrb[0].mxu1 %v364_v1  ;;  %v367_v25 = vpack.c.bf16 %v360_v21, %v359_v20  ;;  %v997_v29 = vpack.c.bf16 %v990_v28, %v989_v27  ;;  %v362_v30 = vld [vmem:[#allocation2 + $0x59] sm:$0xff]  ;;  %v318_v35 = vld [vmem:[#allocation2 + $0x8] sm:$0xff]  ;;  %v319_v46 = vld [vmem:[#allocation2 + $0x10] sm:$0xff] }
  0x27   : > { %2434 = vmatmul.mubr.bf16.vlgmr.msra.gmra.mrb[0].mxu0 %v994_v2  ;;  %2334 = vmatpush3.bf16.msra.mxu1 %v2690_v38  ;;  %v368_v34 = vpack.c.bf16 %v362_v30, %v308_v8  ;;  %v1152_v36 = vld [vmem:[#allocation2 + $0xc] sm:$0xff]  ;;  %v2935_v37 = vld [vmem:[#allocation2 + $0x14] sm:$0xff]  ;;  %v329_v41 = vpack.c.bf16 %v318_v35, %v2754_v4  ;;  %v2960_v50 = vld [vmem:[#allocation2 + $0x1c] sm:$0xff] }
  0x28   : > { %2446 = vmatpush3.bf16.msra.mxu0 %v2691_v42  ;;  %2335 = vmatprep.subr.bf16.mxu1 %v2692_v59  ;;  %v2700_v38 = vld [vmem:[%s3194_s3 + $0x28] sm:$0xff]   ;;  %v1164_v42 = vpack.c.bf16 %v2935_v37, %v1152_v36  ;;  %v2704_v4 = vld [vmem:[%s3194_s3 + $0x38] sm:$0xff]   ;;  %v2707_v52 = vld [vmem:[%s3194_s3 + $0x180] sm:$0xff]   ;;  %v1335_v32 = vpack.c.bf16 %v2960_v50, %v2935_v37 }
  0x29   : > { %2447 = vmatprep.subr.bf16.mxu0 %v2693_v3  ;;  %2325 = vmatprep.mubr.bf16.mxu1 %v365_v9  ;;  %v320_v47 = vld [vmem:[#allocation2 + $0x18] sm:$0xff]  ;;  %v2962_v51 = vld [vmem:[#allocation2 + $0x24] sm:$0xff]  ;;  %v2967_v55 = vld [vmem:[#allocation2 + $0x2c] sm:$0xff] }
  0x2a   : > { %2437 = vmatprep.mubr.bf16.mxu0 %v995_v10  ;;  %v321_v53 = vld [vmem:[#allocation2 + $0x20] sm:$0xff]  ;;  %v322_v54 = vld [vmem:[#allocation2 + $0x28] sm:$0xff]  ;;  %v330_v56 = vpack.c.bf16 %v320_v47, %v319_v46  ;;  %v1165_v57 = vpack.c.bf16 %v2962_v51, %v2960_v50  ;;  %v323_v0 = vld [vmem:[#allocation2 + $0x30] sm:$0xff] }
  0x2b   : > { %2336 = vmatpush3.bf16.msra.mxu1 %v2692_v59  ;;  %v2971_v59 = vld [vmem:[#allocation2 + $0x34] sm:$0xff]  ;;  %v331_v62 = vpack.c.bf16 %v322_v54, %v321_v53  ;;  %v2986_v5 = vld [vmem:[#allocation2 + $0x44] sm:$0xff]  ;;  %v3008_v20 = vld [vmem:[#allocation2 + $0x5c] sm:$0xff] }
  0x2c   : > { %2448 = vmatpush3.bf16.msra.mxu0 %v2693_v3  ;;  %2337 = vmatprep.subr.bf16.mxu1 %v2694_v11  ;;  %v1166_v63 = vpack.c.bf16 %v2971_v59, %v2967_v55  ;;  %v324_v1 = vld [vmem:[#allocation2 + $0x38] sm:$0xff]  ;;  %v2710_v2 = vld [vmem:[%s3194_s3 + $0x90] sm:$0xff]   ;;  %v325_v7 = vld [vmem:[#allocation2 + $0x40] sm:$0xff] }
  0x2d   : > { %2449 = vmatprep.subr.bf16.mxu0 %v2695_v12  ;;  %v2984_v3 = vld [vmem:[#allocation2 + $0x3c] sm:$0xff]  ;;  %v2711_v6 = vld [vmem:[%s3194_s3 + $0x190] sm:$0xff]   ;;  %v332_v8 = vpack.c.bf16 %v324_v1, %v323_v0  ;;  %v326_v10 = vld [vmem:[#allocation2 + $0x48] sm:$0xff] }
  0x2e   : > { %2326 = vmatmul.mubr.bf16.gmra.mrb[4].mxu1 %v366_v16  ;;  %v1167_v9 = vpack.c.bf16 %v2986_v5, %v2984_v3  ;;  %v2713_v14 = vld [vmem:[%s3194_s3 + $0x198] sm:$0xff]   ;;  %v333_v15 = vpack.c.bf16 %v326_v10, %v325_v7  ;;  %v2714_v17 = vld [vmem:[%s3194_s3 + $0xa0] sm:$0xff]   ;;  %v3017_v27 = vld [vmem:[#allocation2 + $0xa] sm:$0xff]  ;;  %v1337_v47 = vpack.c.bf16 %v2984_v3, %v2971_v59 }
  0x2f   : > { %2338 = vmatpush3.bf16.msra.mxu1 %v2694_v11  ;;  %2438 = vmatmul.mubr.bf16.gmra.mrb[4].mxu0 %v996_v24  ;;  %v2993_v11 = vld [vmem:[#allocation2 + $0x4c] sm:$0xff]  ;;  %v328_v19 = vld [vmem:[#allocation2 + $0x58] sm:$0xff]  ;;  %v3010_v21 = vld [vmem:[#allocation2 + $0x64] sm:$0xff] }
  0x30   : > { %2450 = vmatpush3.bf16.msra.mxu0 %v2695_v12  ;;  %2339 = vmatprep.subr.bf16.mxu1 %v2696_v13  ;;  %v2995_v12 = vld [vmem:[#allocation2 + $0x54] sm:$0xff]  ;;  %v2716_v28 = vld [vmem:[%s3194_s3 + $0xa8] sm:$0xff]   ;;  %v1338_v54 = vpack.c.bf16 %v2993_v11, %v2986_v5  ;;  %v2730_v1 = vld [vmem:[%s3194_s3 + $0xe0] sm:$0xff]  }
  0x31   : > { %2451 = vmatprep.subr.bf16.mxu0 %v2697_v18  ;;  %2329 = vmatprep.mubr.bf16.mxu1 %v367_v25  ;;  %v1168_v16 = vpack.c.bf16 %v2995_v12, %v2993_v11  ;;  %v1169_v25 = vpack.c.bf16 %v3010_v21, %v3008_v20  ;;  %v2720_v35 = vld [vmem:[%s3194_s3 + $0xb8] sm:$0xff]   ;;  %v1334_v0 = vld [vmem:[#allocation2 + $0x6c] sm:$0xff] }
  0x32   : > { %2441 = vmatprep.mubr.bf16.mxu0 %v997_v29  ;;  %v2717_v29 = vld [vmem:[%s3194_s3 + $0x1a8] sm:$0xff]   ;;  %v2721_v36 = vld [vmem:[%s3194_s3 + $0x1b8] sm:$0xff]   ;;  %v1340_v5 = vpack.c.bf16 %v1334_v0, %v3010_v21  ;;  %v2734_v11 = vld [vmem:[%s3194_s3 + $0xf0] sm:$0xff]  }
  0x33   : > { %2340 = vmatpush3.bf16.msra.mxu1 %v2696_v13  ;;  %v2712_v13 = vld [vmem:[%s3194_s3 + $0x98] sm:$0xff]   ;;  %v2732_v7 = vld [vmem:[%s3194_s3 + $0xe8] sm:$0xff]  }
  0x34   : > { %2452 = vmatpush3.bf16.msra.mxu0 %v2697_v18  ;;  %2341 = vmatprep.subr.bf16.mxu1 %v2698_v22  ;;  %v327_v18 = vld [vmem:[#allocation2 + $0x50] sm:$0xff]  ;;  %v3070_v50 = vld [vmem:[#allocation2 + $0x3a] sm:$0xff] }
  0x35   : > { %2453 = vmatprep.subr.bf16.mxu0 %v2699_v23  ;;  %v334_v24 = vpack.c.bf16 %v328_v19, %v327_v18  ;;  %v3040_v37 = vld [vmem:[#allocation2 + $0x12] sm:$0xff]  ;;  %v2739_v19 = vld [vmem:[%s3194_s3 + $0x208] sm:$0xff]  }
  0x36   : > { %2330 = vmatmul.mubr.bf16.gmra.mrb[8].mxu1 %v368_v34  ;;  %v2719_v34 = vld [vmem:[%s3194_s3 + $0x1b0] sm:$0xff]   ;;  %v2729_v59 = vld [vmem:[%s3194_s3 + $0x1d8] sm:$0xff]  }
  0x37   : > { %2342 = vmatpush3.bf16.msra.mxu1 %v2698_v22  ;;  %2442 = vmatmul.mubr.bf16.gmra.mrb[8].mxu0 %v998_v40  ;;  %v2715_v22 = vld [vmem:[%s3194_s3 + $0x1a0] sm:$0xff]   ;;  %v1498_v18 = vld [vmem:[#allocation2 + $0x35] sm:$0xff] }
  0x38   : > { %2454 = vmatpush3.bf16.msra.mxu0 %v2699_v23  ;;  %2343 = vmatprep.subr.bf16.mxu1 %v2700_v38  ;;  %v639_v23 = vld [vmem:[#allocation2 + $0x2] sm:$0xff]  ;;  %v1508_v21 = vpack.c.bf16 %v306_v58, %v1498_v18  ;;  %v1502_v49 = vld [vmem:[#allocation2 + $0x55] sm:$0xff] }
  0x39   : > { %2455 = vmatprep.subr.bf16.mxu0 %v2701_v39  ;;  %2349 = vmatprep.mubr.bf16.mxu1 %v329_v41  ;;  %v651_v30 = vpack.c.bf16 %v3017_v27, %v639_v23  ;;  %v2723_v40 = vld [vmem:[%s3194_s3 + $0x1c0] sm:$0xff]   ;;  %v1501_v23 = vld [vmem:[#allocation2 + $0x4d] sm:$0xff] }
  0x3a   : > { %2461 = vmatprep.mubr.bf16.mxu0 %v1164_v42  ;;  %v1336_v42 = vpack.c.bf16 %v2967_v55, %v2962_v51  ;;  %v2726_v51 = vld [vmem:[%s3194_s3 + $0xd0] sm:$0xff]   ;;  %v3082_v55 = vld [vmem:[#allocation2 + $0x42] sm:$0xff] }
  0x3b   : > { %2344 = vmatpush3.bf16.msra.mxu1 %v2700_v38  ;;  %v3042_v38 = vld [vmem:[#allocation2 + $0x1a] sm:$0xff] }
  0x3c   : > { %2456 = vmatpush3.bf16.msra.mxu0 %v2701_v39  ;;  %2345 = vmatprep.subr.bf16.mxu1 %v2702_v43  ;;  %v2722_v39 = vld [vmem:[%s3194_s3 + $0xc0] sm:$0xff]   ;;  %v652_v41 = vpack.c.bf16 %v3042_v38, %v3040_v37 }
  0x3d   : > { %2457 = vmatprep.subr.bf16.mxu0 %v2703_v44  ;;  %v1503_v58 = vld [vmem:[#allocation2 + $0x5d] sm:$0xff] }
  0x3f   : > { %2346 = vmatpush3.bf16.msra.mxu1 %v2702_v43  ;;  %v3054_v43 = vld [vmem:[#allocation2 + $0x22] sm:$0xff] }
  0x40   : > { %2458 = vmatpush3.bf16.msra.mxu0 %v2703_v44  ;;  %2347 = vmatprep.subr.bf16.mxu1 %v2704_v4  ;;  %v3056_v44 = vld [vmem:[#allocation2 + $0x2a] sm:$0xff] }
  0x41   : > { %2459 = vmatprep.subr.bf16.mxu0 %v2705_v45  ;;  %v653_v46 = vpack.c.bf16 %v3056_v44, %v3054_v43 }
  0x43   : > { %2348 = vmatpush3.bf16.msra.mxu1 %v2704_v4  ;;  %v2724_v4 = vld [vmem:[%s3194_s3 + $0xc8] sm:$0xff]  }
  0x44   : > { %2460 = vmatpush3.bf16.msra.mxu0 %v2705_v45  ;;  %2361 = vmatprep.subr.bf16.mxu1 %v2706_v48  ;;  %v2725_v45 = vld [vmem:[%s3194_s3 + $0x1c8] sm:$0xff]  }
  0x45   : > { %2473 = vmatprep.subr.bf16.mxu0 %v2707_v52 }
  0x46   : > { %2350 = vmatmul.mubr.bf16.vlgmr.msra.gmra.mrb[0].mxu1 %v330_v56  ;;  %v3084_v56 = vld [vmem:[#allocation2 + $0x4a] sm:$0xff] }
  0x47   : > { %2462 = vmatmul.mubr.bf16.vlgmr.msra.gmra.mrb[0].mxu0 %v1165_v57  ;;  %2362 = vmatpush3.bf16.msra.mxu1 %v2706_v48  ;;  %v3068_v48 = vld [vmem:[#allocation2 + $0x32] sm:$0xff] }
  0x48   : > { %2474 = vmatpush3.bf16.msra.mxu0 %v2707_v52  ;;  %2363 = vmatprep.subr.bf16.mxu1 %v2708_v60  ;;  %v2727_v52 = vld [vmem:[%s3194_s3 + $0x1d0] sm:$0xff]   ;;  %v654_v53 = vpack.c.bf16 %v3070_v50, %v3068_v48  ;;  %v2728_v57 = vld [vmem:[%s3194_s3 + $0xd8] sm:$0xff]  }
  0x49   : > { %2475 = vmatprep.subr.bf16.mxu0 %v2709_v61  ;;  %2353 = vmatprep.mubr.bf16.mxu1 %v331_v62  ;;  %v3096_v62 = vld [vmem:[#allocation2 + $0x52] sm:$0xff] }
  0x4a   : > { %2465 = vmatprep.mubr.bf16.mxu0 %v1166_v63  ;;  %v3098_v63 = vld [vmem:[#allocation2 + $0x5a] sm:$0xff] }
  0x4b   : > { %2364 = vmatpush3.bf16.msra.mxu1 %v2708_v60  ;;  %v655_v60 = vpack.c.bf16 %v3084_v56, %v3082_v55  ;;  %v656_v3 = vpack.c.bf16 %v3098_v63, %v3096_v62 }
  0x4c   : > { %2476 = vmatpush3.bf16.msra.mxu0 %v2709_v61  ;;  %2365 = vmatprep.subr.bf16.mxu1 %v2710_v2  ;;  %v1339_v61 = vpack.c.bf16 %v3008_v20, %v2995_v12  ;;  %v2735_v12 = vld [vmem:[%s3194_s3 + $0x1f0] sm:$0xff]   ;;  %v824_v20 = vpack.c.bf16 %v3068_v48, %v3056_v44  ;;  %v1671_v48 = vld [vmem:[#allocation2 + $0x46] sm:$0xff] }
  0x4d   : > { %2477 = vmatprep.subr.bf16.mxu0 %v2711_v6 }
  0x4e   : > { %2354 = vmatmul.mubr.bf16.gmra.mrb[4].mxu1 %v332_v8  ;;  %v2733_v8 = vld [vmem:[%s3194_s3 + $0x1e8] sm:$0xff]  }
  0x4f   : > { %2466 = vmatmul.mubr.bf16.gmra.mrb[4].mxu0 %v1167_v9  ;;  %2366 = vmatpush3.bf16.msra.mxu1 %v2710_v2  ;;  %v2731_v2 = vld [vmem:[%s3194_s3 + $0x1e0] sm:$0xff]   ;;  %v822_v9 = vpack.c.bf16 %v3040_v37, %v3017_v27 }
  0x50   : > { %2478 = vmatpush3.bf16.msra.mxu0 %v2711_v6  ;;  %2367 = vmatprep.subr.bf16.mxu1 %v2712_v13  ;;  %v1495_v6 = vld [vmem:[#allocation2 + $0x1d] sm:$0xff] }
  0x51   : > { %2479 = vmatprep.subr.bf16.mxu0 %v2713_v14  ;;  %2357 = vmatprep.mubr.bf16.mxu1 %v333_v15  ;;  %v1506_v10 = vpack.c.bf16 %v1495_v6, %v302_v31  ;;  %v2737_v31 = vld [vmem:[%s3194_s3 + $0x1f8] sm:$0xff]   ;;  %v2738_v15 = vld [vmem:[%s3194_s3 + $0x200] sm:$0xff]  }
  0x52   : > { %2469 = vmatprep.mubr.bf16.mxu0 %v1168_v16  ;;  %v823_v16 = vpack.c.bf16 %v3054_v43, %v3042_v38 }
  0x53   : > { %2368 = vmatpush3.bf16.msra.mxu1 %v2712_v13  ;;  %v1496_v13 = vld [vmem:[#allocation2 + $0x25] sm:$0xff] }
  0x54   : > { %2480 = vmatpush3.bf16.msra.mxu0 %v2713_v14  ;;  %2369 = vmatprep.subr.bf16.mxu1 %v2714_v17  ;;  %v1497_v14 = vld [vmem:[#allocation2 + $0x2d] sm:$0xff] }
  0x55   : > { %2481 = vmatprep.subr.bf16.mxu0 %v2715_v22 }
  0x56   : > { %2358 = vmatmul.mubr.bf16.gmra.mrb[8].mxu1 %v334_v24  ;;  %v2740_v24 = vld [vmem:[%s3194_s3 + $0x210] sm:$0xff]  }
  0x57   : > { %2470 = vmatmul.mubr.bf16.gmra.mrb[8].mxu0 %v1169_v25  ;;  %2370 = vmatpush3.bf16.msra.mxu1 %v2714_v17  ;;  %v1507_v17 = vpack.c.bf16 %v1497_v14, %v1496_v13  ;;  %v825_v25 = vpack.c.bf16 %v3082_v55, %v3070_v50  ;;  %v1672_v50 = vld [vmem:[#allocation2 + $0x4e] sm:$0xff] }
  0x58   : > { %2482 = vmatpush3.bf16.msra.mxu0 %v2715_v22  ;;  %2371 = vmatprep.subr.bf16.mxu1 %v2716_v28  ;;  %v1500_v22 = vld [vmem:[#allocation2 + $0x45] sm:$0xff] }
  0x59   : > { %2483 = vmatprep.subr.bf16.mxu0 %v2717_v29  ;;  %2377 = vmatprep.mubr.bf16.mxu1 %v651_v30  ;;  %v1509_v27 = vpack.c.bf16 %v1501_v23, %v1500_v22  ;;  %v1510_v30 = vpack.c.bf16 %v1503_v58, %v1502_v49 }
  0x5a   : > { %2489 = vmatprep.mubr.bf16.mxu0 %v1335_v32  ;;  %v821_v32 = vld [vmem:[#allocation2 + $0x62] sm:$0xff] }
  0x5b   : > { %2372 = vmatpush3.bf16.msra.mxu1 %v2716_v28  ;;  %v2741_v28 = vld [vmem:[%s3194_s3 + $0x218] sm:$0xff]   ;;  %v827_v37 = vpack.c.bf16 %v821_v32, %v3098_v63 }
  0x5c   : > { %2484 = vmatpush3.bf16.msra.mxu0 %v2717_v29  ;;  %2373 = vmatprep.subr.bf16.mxu1 %v2718_v33  ;;  %v826_v29 = vpack.c.bf16 %v3096_v62, %v3084_v56  ;;  %v1675_v56 = vld [vmem:[#allocation2 + $0x66] sm:$0xff] }
  0x5d   : > { %2485 = vmatprep.subr.bf16.mxu0 %v2719_v34 }
  0x5f   : > { %2374 = vmatpush3.bf16.msra.mxu1 %v2718_v33  ;;  %v1504_v33 = vld [vmem:[#allocation2 + $0x65] sm:$0xff] }
  0x60   : > { %2486 = vmatpush3.bf16.msra.mxu0 %v2719_v34  ;;  %2375 = vmatprep.subr.bf16.mxu1 %v2720_v35  ;;  %v1505_v34 = vld [vmem:[#allocation2 + $0x6d] sm:$0xff] }
  0x61   : > { %2487 = vmatprep.subr.bf16.mxu0 %v2721_v36  ;;  %v1511_v38 = vpack.c.bf16 %v1505_v34, %v1504_v33 }
  0x63   : > { %2376 = vmatpush3.bf16.msra.mxu1 %v2720_v35  ;;  %v2742_v35 = vld [vmem:[%s3194_s3 + $0x220] sm:$0xff]  }
  0x64   : > { %2488 = vmatpush3.bf16.msra.mxu0 %v2721_v36  ;;  %2389 = vmatprep.subr.bf16.mxu1 %v2722_v39  ;;  %v1665_v36 = vld [vmem:[#allocation2 + $0x16] sm:$0xff] }
  0x65   : > { %2501 = vmatprep.subr.bf16.mxu0 %v2723_v40 }
  0x66   : > { %2378 = vmatmul.mubr.bf16.vlgmr.msra.gmra.mrb[0].mxu1 %v652_v41  ;;  %v1670_v41 = vld [vmem:[#allocation2 + $0x3e] sm:$0xff] }
  0x67   : > { %2490 = vmatmul.mubr.bf16.vlgmr.msra.gmra.mrb[0].mxu0 %v1336_v42  ;;  %2390 = vmatpush3.bf16.msra.mxu1 %v2722_v39  ;;  %v1666_v39 = vld [vmem:[#allocation2 + $0x1e] sm:$0xff]  ;;  %v2743_v42 = vld [vmem:[%s3194_s3 + $0x228] sm:$0xff]  }
  0x68   : > { %2502 = vmatpush3.bf16.msra.mxu0 %v2723_v40  ;;  %2391 = vmatprep.subr.bf16.mxu1 %v2724_v4  ;;  %v1669_v40 = vld [vmem:[#allocation2 + $0x36] sm:$0xff]  ;;  %v1677_v43 = vpack.c.bf16 %v1666_v39, %v1665_v36 }
  0x69   : > { %2503 = vmatprep.subr.bf16.mxu0 %v2725_v45  ;;  %2381 = vmatprep.mubr.bf16.mxu1 %v653_v46  ;;  %v1679_v44 = vpack.c.bf16 %v1670_v41, %v1669_v40  ;;  %v1667_v46 = vld [vmem:[#allocation2 + $0x26] sm:$0xff] }
  0x6a   : > { %2493 = vmatprep.mubr.bf16.mxu0 %v1337_v47  ;;  %v1668_v47 = vld [vmem:[#allocation2 + $0x2e] sm:$0xff] }
  0x6b   : > { %2392 = vmatpush3.bf16.msra.mxu1 %v2724_v4  ;;  %v2744_v4 = vld [vmem:[%s3194_s3 + $0x230] sm:$0xff]  }
  0x6c   : > { %2504 = vmatpush3.bf16.msra.mxu0 %v2725_v45  ;;  %2393 = vmatprep.subr.bf16.mxu1 %v2726_v51  ;;  %v2745_v45 = vld [vmem:[%s3194_s3 + $0x238] sm:$0xff]  }
  0x6d   : > { %2505 = vmatprep.subr.bf16.mxu0 %v2727_v52 }
  0x6e   : > { %2382 = vmatmul.mubr.bf16.gmra.mrb[4].mxu1 %v654_v53  ;;  %v1678_v53 = vpack.c.bf16 %v1668_v47, %v1667_v46 }
  0x6f   : > { %2494 = vmatmul.mubr.bf16.gmra.mrb[4].mxu0 %v1338_v54  ;;  %2394 = vmatpush3.bf16.msra.mxu1 %v2726_v51  ;;  %v1673_v51 = vld [vmem:[#allocation2 + $0x56] sm:$0xff]  ;;  %v1680_v54 = vpack.c.bf16 %v1672_v50, %v1671_v48 }
  0x70   : > { %2506 = vmatpush3.bf16.msra.mxu0 %v2727_v52  ;;  %2395 = vmatprep.subr.bf16.mxu1 %v2728_v57  ;;  %v1674_v52 = vld [vmem:[#allocation2 + $0x5e] sm:$0xff] }
  0x71   : > { %2507 = vmatprep.subr.bf16.mxu0 %v2729_v59  ;;  %2385 = vmatprep.mubr.bf16.mxu1 %v655_v60  ;;  %v1681_v55 = vpack.c.bf16 %v1674_v52, %v1673_v51 }
  0x72   : > { %2497 = vmatprep.mubr.bf16.mxu0 %v1339_v61 }
  0x73   : > { %2396 = vmatpush3.bf16.msra.mxu1 %v2728_v57  ;;  %v1676_v57 = vld [vmem:[#allocation2 + $0x6e] sm:$0xff] }
  0x74   : > { %2508 = vmatpush3.bf16.msra.mxu0 %v2729_v59  ;;  %2397 = vmatprep.subr.bf16.mxu1 %v2730_v1  ;;  %v1682_v59 = vpack.c.bf16 %v1676_v57, %v1675_v56 }
  0x75   : > { %2509 = vmatprep.subr.bf16.mxu0 %v2731_v2 }
  0x76   : > { %2386 = vmatmul.mubr.bf16.gmra.mrb[8].mxu1 %v656_v3 }
  0x77   : > { %2498 = vmatmul.mubr.bf16.gmra.mrb[8].mxu0 %v1340_v5  ;;  %2398 = vmatpush3.bf16.msra.mxu1 %v2730_v1 }
  0x78   : > { %2510 = vmatpush3.bf16.msra.mxu0 %v2731_v2  ;;  %2399 = vmatprep.subr.bf16.mxu1 %v2732_v7 }
  0x79   : > { %2511 = vmatprep.subr.bf16.mxu0 %v2733_v8  ;;  %2405 = vmatprep.mubr.bf16.mxu1 %v822_v9 }
  0x7a   : > { %2517 = vmatprep.mubr.bf16.mxu0 %v1506_v10 }
  0x7b   : > { %2400 = vmatpush3.bf16.msra.mxu1 %v2732_v7 }
  0x7c   : > { %2512 = vmatpush3.bf16.msra.mxu0 %v2733_v8  ;;  %2401 = vmatprep.subr.bf16.mxu1 %v2734_v11 }
  0x7d   : > { %2513 = vmatprep.subr.bf16.mxu0 %v2735_v12 }
  0x7f   : > { %2402 = vmatpush3.bf16.msra.mxu1 %v2734_v11 }
  0x80   : > { %2514 = vmatpush3.bf16.msra.mxu0 %v2735_v12  ;;  %2403 = vmatprep.subr.bf16.mxu1 %v2736_v26 }
  0x81   : > { %2515 = vmatprep.subr.bf16.mxu0 %v2737_v31 }
  0x83   : > { %2404 = vmatpush3.bf16.msra.mxu1 %v2736_v26 }
  0x84   : > { %2516 = vmatpush3.bf16.msra.mxu0 %v2737_v31  ;;  %2557 = vmatprep.subr.bf16.mxu1 %v2738_v15 }
  0x85   : > { %2529 = vmatprep.subr.bf16.mxu0 %v2738_v15 }
  0x86   : > { %2406 = vmatmul.mubr.bf16.vlgmr.msra.gmra.mrb[0].mxu1 %v823_v16 }
  0x87   : > { %2518 = vmatmul.mubr.bf16.vlgmr.msra.gmra.mrb[0].mxu0 %v1507_v17  ;;  %2565 = vmatpush3.bf16.msra.mxu1 %v2738_v15 }
  0x88   : > { %2530 = vmatpush3.bf16.msra.mxu0 %v2738_v15  ;;  %2558 = vmatprep.subr.bf16.mxu1 %v2739_v19 }
  0x89   : > { %2531 = vmatprep.subr.bf16.mxu0 %v2739_v19  ;;  %2409 = vmatprep.mubr.bf16.mxu1 %v824_v20 }
  0x8a   : > { %2521 = vmatprep.mubr.bf16.mxu0 %v1508_v21 }
  0x8b   : > { %2566 = vmatpush3.bf16.msra.mxu1 %v2739_v19 }
  0x8c   : > { %2532 = vmatpush3.bf16.msra.mxu0 %v2739_v19  ;;  %2559 = vmatprep.subr.bf16.mxu1 %v2740_v24 }
  0x8d   : > { %2533 = vmatprep.subr.bf16.mxu0 %v2740_v24 }
  0x8e   : > { %2410 = vmatmul.mubr.bf16.gmra.mrb[4].mxu1 %v825_v25 }
  0x8f   : > { %2522 = vmatmul.mubr.bf16.gmra.mrb[4].mxu0 %v1509_v27  ;;  %2567 = vmatpush3.bf16.msra.mxu1 %v2740_v24 }
  0x90   : > { %2534 = vmatpush3.bf16.msra.mxu0 %v2740_v24  ;;  %2560 = vmatprep.subr.bf16.mxu1 %v2741_v28 }
  0x91   : > { %2535 = vmatprep.subr.bf16.mxu0 %v2741_v28  ;;  %2413 = vmatprep.mubr.bf16.mxu1 %v826_v29 }
  0x92   : > { %2525 = vmatprep.mubr.bf16.mxu0 %v1510_v30 }
  0x93   : > { %2568 = vmatpush3.bf16.msra.mxu1 %v2741_v28 }
  0x94   : > { %2536 = vmatpush3.bf16.msra.mxu0 %v2741_v28  ;;  %2561 = vmatprep.subr.bf16.mxu1 %v2742_v35 }
  0x95   : > { %2537 = vmatprep.subr.bf16.mxu0 %v2742_v35 }
  0x96   : > { %2414 = vmatmul.mubr.bf16.gmra.mrb[8].mxu1 %v827_v37 }
  0x97   : > { %2526 = vmatmul.mubr.bf16.gmra.mrb[8].mxu0 %v1511_v38  ;;  %2569 = vmatpush3.bf16.msra.mxu1 %v2742_v35 }
  0x98   : > { %2538 = vmatpush3.bf16.msra.mxu0 %v2742_v35  ;;  %2562 = vmatprep.subr.bf16.mxu1 %v2743_v42 }
  0x99   : > { %2539 = vmatprep.subr.bf16.mxu0 %v2743_v42  ;;  %2545 = vmatprep.mubr.bf16.mxu0 %v1677_v43 }
  0x9a   : > { %2549 = vmatprep.mubr.bf16.mxu1 %v1679_v44 }
  0x9b   : > { %2570 = vmatpush3.bf16.msra.mxu1 %v2743_v42 }
  0x9c   : > { %2540 = vmatpush3.bf16.msra.mxu0 %v2743_v42  ;;  %2563 = vmatprep.subr.bf16.mxu1 %v2744_v4 }
  0x9d   : > { %2541 = vmatprep.subr.bf16.mxu0 %v2744_v4 }
  0x9f   : > { %2571 = vmatpush3.bf16.msra.mxu1 %v2744_v4 }
  0xa0   : > { %2542 = vmatpush3.bf16.msra.mxu0 %v2744_v4  ;;  %2564 = vmatprep.subr.bf16.mxu1 %v2745_v45 }
  0xa1   : > { %2543 = vmatprep.subr.bf16.mxu0 %v2745_v45 }
  0xa3   : > { %2572 = vmatpush3.bf16.msra.mxu1 %v2745_v45 }
  0xa4   : > { %2544 = vmatpush3.bf16.msra.mxu0 %v2745_v45 }
  0xa6   : > { %2550 = vmatmul.mubr.bf16.vlgmr.msra.gmra.mrb[12].mxu1 %v1680_v54 }
  0xa7   : > { %2546 = vmatmul.mubr.bf16.vlgmr.msra.gmra.mrb[0].mxu0 %v1678_v53  ;;  %2553 = vmatprep.mubr.bf16.mxu1 %v1681_v55 }
  0xae   : > { %2554 = vmatmul.mubr.bf16.gmra.mrb[16].mxu1 %v1682_v59 }
 0x159   : > { %v2407_v60 = vpop.f32.mrb[0].mxu1 }
 0x15a   : > { %v926_v61 = vpop.f32.mrb[1].mxu1 }
 0x15b   : > { %v2408_v62 = vpop.f32.mrb[2].mxu1 }
 0x15c   : > { %v929_v63 = vpop.f32.mrb[3].mxu1 }
 0x161   : > { %v2411_v0 = vpop.f32.mrb[4].mxu1 }
 0x162   : > { %v2523_v1 = vpop.f32.mrb[4].mxu0  ;;  %v942_v3 = vpop.f32.mrb[5].mxu1 }
 0x163   : > { %v2577_v2 = vadd.f32 %v2523_v1, %v2411_v0  ;;  %v1626_v5 = vpop.f32.mrb[5].mxu0  ;;  %v2412_v7 = vpop.f32.mrb[6].mxu1 }
 0x164   : > { %v2579_v6 = vadd.f32 %v1626_v5, %v942_v3  ;;  %v2524_v8 = vpop.f32.mrb[6].mxu0  ;;  %v945_v10 = vpop.f32.mrb[7].mxu1 }
 0x165   : > { %v2581_v9 = vadd.f32 %v2524_v8, %v2412_v7  ;;  %v1629_v11 = vpop.f32.mrb[7].mxu0 }
 0x166   : > { %v2583_v12 = vadd.f32 %v1629_v11, %v945_v10 }
 0x169   : > { %v2415_v26 = vpop.f32.mrb[8].mxu1 }
 0x16a   : > { %v2527_v31 = vpop.f32.mrb[8].mxu0  ;;  %v958_v13 = vpop.f32.mrb[9].mxu1 }
 0x16b   : > { %v1642_v14 = vpop.f32.mrb[9].mxu0  ;;  %v2416_v16 = vpop.f32.mrb[10].mxu1 }
 0x16c   : > { %v2585_v15 = vadd.f32 %v1642_v14, %v958_v13  ;;  %v2528_v17 = vpop.f32.mrb[10].mxu0  ;;  %v961_v18 = vpop.f32.mrb[11].mxu1 }
 0x16d   : > { %v1645_v19 = vpop.f32.mrb[11].mxu0 }
 0x16e   : > { %v2587_v20 = vadd.f32 %v1645_v19, %v961_v18 }
 0x179   : > { %v2551_v22 = vpop.f32.mrb[12].mxu1 }
 0x17a   : > { %v2547_v21 = vpop.f32.mrb[0].mxu0  ;;  %v2578_v24 = vadd.f32 %v2577_v2, %v2551_v22  ;;  %v1797_v27 = vpop.f32.mrb[13].mxu1 }
 0x17b   : > { %v2573_v23 = vadd.f32 %v2547_v21, %v2407_v60  ;;  %v1781_v25 = vpop.f32.mrb[1].mxu0  ;;  %v2580_v58 = vadd.f32 %v2579_v6, %v1797_v27  ;;  %v2552_v29 = vpop.f32.mrb[14].mxu1 }
 0x17c   : > { %v2574_v49 = vadd.f32 %v1781_v25, %v926_v61  ;;  %v2548_v28 = vpop.f32.mrb[2].mxu0  ;;  %v1800_v33 = vpop.f32.mrb[15].mxu1  ;;  %v2582_v35 = vadd.f32 %v2581_v9, %v2552_v29  ;;  %v1857_v41 = vrot.slane %v2578_v24, 2 }
 0x17d   : > { %v2575_v30 = vadd.f32 %v2548_v28, %v2408_v62  ;;  %v1784_v32 = vpop.f32.mrb[3].mxu0  ;;  %v1852_v34 = vrot.slane %v2580_v58, 6  ;;  %v1845_v37 = vrot.slane %v2573_v23, 4  ;;  %v2584_v40 = vadd.f32 %v2583_v12, %v1800_v33 }
 0x17e   : > { %v2576_v36 = vadd.f32 %v1784_v32, %v929_v63  ;;  %v1858_v42 = vrot.slane %v2582_v35, 2  ;;  %v1840_v44 = vrot.slane %v2573_v23, 2  ;;  %v1924_v50 = vmul.f32 %v2574_v49, %v2574_v49 }
 0x17f   : > { %v1846_v38 = vrot.slane %v2575_v30, 4  ;;  %v1851_v39 = vrot.slane %v2575_v30, 6  ;;  %v1862_v60 = vrot.slane %v2582_v35, 4  ;;  %v1928_v11 = vmul.f32 %v2584_v40, %v2584_v40 }
 0x180   : > { %v1839_v43 = vrot.slane %v2576_v36, 2  ;;  %v1859_v47 = vsel %vm1838_vm2, %v1857_v41, %v1858_v42 }
 0x181   : > { %v1847_v4 = vsel %vm1844_vm0, %v1845_v37, %v1846_v38  ;;  %v1853_v45 = vsel %vm1850_vm1, %v1851_v39, %v1852_v34  ;;  %v2555_v48 = vpop.f32.mrb[16].mxu1  ;;  %v2166_v52 = vpack.c.bf16 %v1859_v47, %v2584_v40  ;;  %v1929_v31 = vmul.f32 %v1859_v47, %v1859_v47 }
 0x182   : > { %v2161_v46 = vpack.c.bf16 %v1853_v45, %v1847_v4  ;;  %v1841_v51 = vsel %vm1838_vm2, %v1839_v43, %v1840_v44  ;;  %v1813_v53 = vpop.f32.mrb[17].mxu1  ;;  %v1926_v62 = vmul.f32 %v1847_v4, %v1847_v4  ;;  %v1927_v3 = vmul.f32 %v1853_v45, %v1853_v45 }
 0x183   : > { %v2156_v54 = vpack.c.bf16 %v1841_v51, %v2574_v49  ;;  %v1911_v55 = vadd.f32 %v2574_v49, %v1841_v51  ;;  %v1925_v56 = vmul.f32 %v1841_v51, %v1841_v51  ;;  %v2586_v57 = vadd.f32 %v2585_v15, %v1813_v53  ;;  %v2556_v59 = vpop.f32.mrb[18].mxu1  ;;  %2177 = vst [vmem:[%s3173_s28 + $0x10] sm:$0xff] %v2166_v52  }
 0x184   : > { %2176 = vst [vmem:[%s3173_s28 + $0x8] sm:$0xff] %v2161_v46   ;;  %v1816_v61 = vpop.f32.mrb[19].mxu1 }
 0x185   : > { %2157 = vst [vmem:[%s3173_s28] sm:$0xff] %v2156_v54   ;;  %v1932_v63 = vadd.f32 %v1925_v56, %v1924_v50  ;;  %v1912_v0 = vadd.f32 %v1911_v55, %v1847_v4  ;;  %v1863_v1 = vrot.slane %v2586_v57, 4  ;;  %v2588_v2 = vadd.f32 %v2587_v20, %v1816_v61 }
 0x186   : > { %v1867_v8 = vrot.slane %v2586_v57, 6 }
 0x187   : > { %v1913_v5 = vadd.f32 %v1912_v0, %v1853_v45  ;;  %v1933_v6 = vadd.f32 %v1932_v63, %v1926_v62  ;;  %v1864_v7 = vsel %vm1844_vm0, %v1862_v60, %v1863_v1  ;;  %v1868_v9 = vrot.slane %v2588_v2, 6 }
 0x188   : > { %v1930_v18 = vmul.f32 %v1864_v7, %v1864_v7 }
 0x189   : > { %v1914_v10 = vadd.f32 %v2584_v40, %v1913_v5  ;;  %v1934_v12 = vadd.f32 %v1933_v6, %v1927_v3  ;;  %v1869_v26 = vsel %vm1850_vm1, %v1867_v8, %v1868_v9 }
 0x18a   : > { %v2171_v15 = vpack.c.bf16 %v1869_v26, %v1864_v7  ;;  %v1931_v21 = vmul.f32 %v1869_v26, %v1869_v26 }
 0x18b   : > { %v1915_v13 = vadd.f32 %v1914_v10, %v1859_v47  ;;  %v1935_v14 = vadd.f32 %v1934_v12, %v1928_v11 }
 0x18c   : > { %2178 = vst [vmem:[%s3173_s28 + $0x18] sm:$0xff] %v2171_v15  }
 0x18d   : > { %v1936_v16 = vadd.f32 %v1935_v14, %v1929_v31  ;;  %v1916_v17 = vadd.f32 %v1915_v13, %v1864_v7 }
 0x18f   : > { %v1937_v19 = vadd.f32 %v1936_v16, %v1930_v18  ;;  %v1917_v20 = vadd.f32 %v1916_v17, %v1869_v26 }
 0x191   : > { %v1918_v22 = vrot.slane %v1917_v20, 4  ;;  %v1938_v23 = vadd.f32 %v1937_v19, %v1931_v21 }
 0x193   : > { %v1919_v24 = vadd.f32 %v1918_v22, %v1917_v20  ;;  %v1939_v25 = vrot.slane %v1938_v23, 4 }
 0x195   : > { %v1920_v27 = vrot.slane %v1919_v24, 2  ;;  %v1940_v49 = vadd.f32 %v1939_v25, %v1938_v23 }
 0x197   : > { %v1921_v58 = vadd.f32 %v1920_v27, %v1919_v24  ;;  %v1941_v28 = vrot.slane %v1940_v49, 2 }
 0x199   : > { %v1922_v29 = vrot.slane %v1921_v58, 1  ;;  %v1942_v30 = vadd.f32 %v1941_v28, %v1940_v49 }
 0x19b   : > { %v1943_v32 = vrot.slane %v1942_v30, 1  ;;  %v1923_v33 = vadd.f32 %v1922_v29, %v1921_v58 }
 0x19d   : > { %v1944_v34 = vadd.f32 %v1943_v32, %v1942_v30 }
 0x19f   : > { %v1946_v35 = vsel %vm1945_vm3, %v1923_v33, %v1944_v34 }
 0x1a0   : > { %1947 = vst [vmem:[%s238_s30] sm:$0x3] %v1946_v35 }
 0x1a1 PF: > { %s16_s18 = sadd.s32 1, %s2752_s18  }
 0x1a2   : > { %p13_p5 = scmp.ge.s32.totalorder %s16_s18, 4  }
 0x1a4   :  { %15 = sbr.rel (!%p13_p5) target bundleno = 1 (0x1), region = 78 }

</bundles_post_ra>
